<compile_context>
chip_gen: v7x
topology: tpu7x:2x2x1
jax: 0.10.0
libtpu: 0.0.40
codegen_flags: <defaults>
</compile_context>

<pallas_src>
import functools

import jax
import jax.numpy as jnp
from jax import lax
from jax.experimental import pallas as pl
from jax.experimental.pallas import tpu as pltpu

_BN_EPS = 1e-5


def _silu(x):
    return x * jax.nn.sigmoid(x)


def _mm(w_bf16, x_bf16):
    """MXU matmul: bf16 inputs, f32 accumulation."""
    return jnp.dot(w_bf16, x_bf16, preferred_element_type=jnp.float32)


# --------------------------------------------------------------------------
# Fused kernel: B images per grid step, everything stays in VMEM.
# --------------------------------------------------------------------------
def _bfa_kernel(x_ref, e_ref, c1w_ref, c1b_ref, wg_ref, bg_ref,
                wc_ref, bc_ref, w3_ref, b3_ref, wr2_ref, br2_ref,
                mask_ref, out_ref, ef_scr, o_scr, t_scr, *, width, hw, batch):
    C = x_ref.shape[1]
    Cr = b3_ref.shape[0]
    L = batch * hw

    c1w = c1w_ref[...]                                   # (C, 1) f32
    c1b = c1b_ref[...]                                   # (C, 1) f32

    # ---- pass 1: edge features (conv1 1x1 + BN + SiLU) and pooled stats ----
    pooled_cols = []
    for b in range(batch):
        x_b = x_ref[b]                                   # (C, HW) f32
        e_b = e_ref[b]                                   # (1, HW) f32
        ef_b = _silu(c1w * e_b + c1b)                    # (C, HW) f32
        ef_scr[:, b * hw:(b + 1) * hw] = ef_b            # stash for pass 2
        x_a = jnp.mean(x_b, axis=1, keepdims=True)       # (C, 1)
        x_m = jnp.max(x_b, axis=1, keepdims=True)
        e_a = jnp.mean(ef_b, axis=1, keepdims=True)
        e_m = jnp.max(ef_b, axis=1, keepdims=True)
        # torch.cat((x_a, e_a, x_m, e_m)) order, flattened as k*C + ci.
        pooled_cols.append(jnp.concatenate([x_a, e_a, x_m, e_m], axis=0))
    pooled = (pooled_cols[0] if batch == 1
              else jnp.concatenate(pooled_cols, axis=1))  # (4C, B) f32

    # ---- gates: conv4_1 / conv1_4 (+BN, ReLU, sigmoid) as one f32 matmul ----
    # Kept in f32 end-to-end: the pooled stats / sigmoid gates are the
    # accuracy-sensitive scalars of this block.
    z = jnp.dot(wg_ref[...], pooled,
                preferred_element_type=jnp.float32) + bg_ref[...]   # (2C, B)
    gate = jax.nn.sigmoid(jnp.maximum(z, 0.0))
    w1 = gate[:C]                                        # (C, B)
    w2 = gate[C:]                                        # (C, B)

    # ---- pass 2: cross gating, streamed into a bf16 (2C, B*HW) scratch ----
    for b in range(batch):
        x_b = x_ref[b]
        ef_b = ef_scr[:, b * hw:(b + 1) * hw]
        w1_b = w1[:, b:b + 1]                            # (C, 1)
        w2_b = w2[:, b:b + 1]
        o_scr[0:C, b * hw:(b + 1) * hw] = (x_b + ef_b * w1_b).astype(jnp.bfloat16)
        o_scr[C:2 * C, b * hw:(b + 1) * hw] = (ef_b + x_b * w2_b).astype(jnp.bfloat16)

    # ---- convo (2C->C) and convo_r1 (2C->Cr) fused: one (C+Cr,2C) matmul ----
    comb = _mm(wc_ref[...], o_scr[...]) + bc_ref[...]    # (C+Cr, B*HW) f32
    branch1 = _silu(comb[:C])                            # (C,  B*HW)
    t1 = _silu(comb[C:])                                 # (Cr, B*HW)

    # ---- conv3 (3x3, padding=1) as im2col: 9 lane-rolled, border-masked taps
    # streamed into a (9*Cr, B*HW) bf16 scratch, then one K=9*Cr matmul.
    # Rolls operate on the concatenated B*HW lane axis; valid taps never cross
    # an image boundary and invalid ones are zeroed by the (tiled) masks.
    for dh in range(3):
        for dw in range(3):
            k = dh * 3 + dw
            off = (dh - 1) * width + (dw - 1)
            if off == 0:
                # center tap: no roll, mask is all-ones -> skip the multiply
                t_scr[k * Cr:(k + 1) * Cr, :] = t1.astype(jnp.bfloat16)
            else:
                rolled = pltpu.roll(t1, shift=(-off) % L, axis=1)
                t_scr[k * Cr:(k + 1) * Cr, :] = (
                    rolled.astype(jnp.bfloat16) * mask_ref[k])
    t2 = _silu(_mm(w3_ref[...], t_scr[...]) + b3_ref[...])          # (Cr, B*HW)

    # ---- convo_r2 (Cr->C) + residual add with branch1 ----
    branch2 = _silu(_mm(wr2_ref[...], t2.astype(jnp.bfloat16)) + br2_ref[...])
    result = branch1 + branch2                           # (C, B*HW) f32

    for b in range(batch):
        out_ref[b] = result[:, b * hw:(b + 1) * hw]


def _border_masks(H, W):
    """(9, 1, H*W) f32 validity masks for the 9 taps of a 3x3 / pad=1 conv."""
    hh = jnp.arange(H, dtype=jnp.int32)[:, None]
    ww = jnp.arange(W, dtype=jnp.int32)[None, :]
    rows = []
    for dh in range(3):
        for dw in range(3):
            oh, ow = dh - 1, dw - 1
            ok = ((hh + oh >= 0) & (hh + oh < H) &
                  (ww + ow >= 0) & (ww + ow < W))
            rows.append(ok.astype(jnp.float32).reshape(1, H * W))
    return jnp.stack(rows, axis=0)


def _pick_batch(N, HW, max_lanes=2048):
    """Images per grid step: amortize per-step overhead, keep >= 2 grid steps
    (v7x has two TensorCores) and a modest lane width (vreg/VMEM pressure)."""
    best = 1
    for b in range(1, N + 1):
        if N % b != 0 or b * HW > max_lanes:
            continue
        if N >= 2 and N // b < 2:
            continue
        best = b
    return best


# --------------------------------------------------------------------------
# Wrapper: NCHW in / NCHW out.
# --------------------------------------------------------------------------
def bfa_forward(x_nchw, edge_nchw, fp):
    N, C, H, W = x_nchw.shape
    HW = H * W
    Cr = fp['b3'].shape[0]
    B = _pick_batch(N, HW)
    L = B * HW

    x = x_nchw.reshape(N, C, HW).astype(jnp.float32)
    e = edge_nchw.reshape(N, 1, HW).astype(jnp.float32)
    # Per-image border masks tiled to the B-image lane width; 0/1 values are
    # exact in bf16 so the tap masking can run at bf16 VALU width.
    masks = jnp.tile(_border_masks(H, W), (1, 1, B)).astype(jnp.bfloat16)

    kernel = functools.partial(_bfa_kernel, width=W, hw=HW, batch=B)
    const2 = lambda n: (0, 0)          # resident weights: fetched once

    out = pl.pallas_call(
        kernel,
        out_shape=jax.ShapeDtypeStruct((N, C, HW), jnp.float32),
        grid=(N // B,),
        in_specs=[
            pl.BlockSpec((B, C, HW), lambda n: (n, 0, 0)),     # x
            pl.BlockSpec((B, 1, HW), lambda n: (n, 0, 0)),     # edge
            pl.BlockSpec((C, 1), const2),                      # c1 scale (f32)
            pl.BlockSpec((C, 1), const2),                      # c1 bias  (f32)
            pl.BlockSpec((2 * C, 4 * C), const2),              # gates W  (f32)
            pl.BlockSpec((2 * C, 1), const2),                  # gates b  (f32)
            pl.BlockSpec((C + Cr, 2 * C), const2),             # [Wo; Wr1] (bf16)
            pl.BlockSpec((C + Cr, 1), const2),                 # [bo; br1]
            pl.BlockSpec((Cr, 9 * Cr), const2),                # W3 im2col (bf16)
            pl.BlockSpec((Cr, 1), const2),                     # b3
            pl.BlockSpec((C, Cr), const2),                     # Wr2 (bf16)
            pl.BlockSpec((C, 1), const2),                      # br2
            pl.BlockSpec((9, 1, L), lambda n: (0, 0, 0)),      # 3x3 border masks
        ],
        out_specs=pl.BlockSpec((B, C, HW), lambda n: (n, 0, 0)),
        scratch_shapes=[
            pltpu.VMEM((C, L), jnp.float32),        # ef (edge features)
            pltpu.VMEM((2 * C, L), jnp.bfloat16),   # o = cat(x_r, e_r)
            pltpu.VMEM((9 * Cr, L), jnp.bfloat16),  # im2col tap stack
        ],
        compiler_params=pltpu.CompilerParams(
            dimension_semantics=("parallel",)),
    )(x, e, fp['c1_w'], fp['c1_b'], fp['w_gates'], fp['b_gates'],
      fp['w_comb'], fp['b_comb'], fp['w3'], fp['b3'], fp['wr2'], fp['br2'],
      masks)
    return out.reshape(N, C, H, W)


# --------------------------------------------------------------------------
# Parameter construction (deterministic, synthetic) + Conv/BN folding into
# the transposed, fused layout consumed by the kernel.
# --------------------------------------------------------------------------
def init_raw_params(C, r, key):
    Cr = 2 * C // r
    keys = jax.random.split(key, 48)
    it = iter(keys)

    def w(shape):
        return 0.1 * jax.random.normal(next(it), shape, jnp.float32)

    def b(shape):
        return 0.05 * jax.random.normal(next(it), shape, jnp.float32)

    def bn(cn):
        g = 1.0 + 0.1 * jax.random.normal(next(it), (cn,), jnp.float32)
        be = 0.05 * jax.random.normal(next(it), (cn,), jnp.float32)
        m = 0.1 * jax.random.normal(next(it), (cn,), jnp.float32)
        v = 1.0 + 0.1 * jnp.abs(jax.random.normal(next(it), (cn,), jnp.float32))
        return (g, be, m, v)

    p = {}
    p['c1_W'], p['c1_bias'], p['bn_c1'] = w((C, 1, 1, 1)), b((C,)), bn(C)
    p['W41'], p['b41'], p['bn_41'] = w((C, C, 4, 1)), b((C,)), bn(C)
    p['W14'], p['b14'], p['bn_14'] = w((C, C, 1, 4)), b((C,)), bn(C)
    p['Wo'], p['bo'], p['bn_o'] = w((C, 2 * C, 1, 1)), b((C,)), bn(C)
    p['Wr1'], p['br1'], p['bn_r1'] = w((Cr, 2 * C, 1, 1)), b((Cr,)), bn(Cr)
    p['W3'], p['b3'], p['bn_3'] = w((Cr, Cr, 3, 3)), b((Cr,)), bn(Cr)
    p['Wr2'], p['br2'], p['bn_r2'] = w((C, Cr, 1, 1)), b((C,)), bn(C)
    return p


def fold_params(raw, C):
    def sf(bnp):
        g, be, m, v = bnp
        s = g / jnp.sqrt(v + _BN_EPS)
        return s, be - m * s

    fp = {}
    # conv1 (1x1, 1->C): per-output-channel scale / bias columns.
    s, t = sf(raw['bn_c1'])
    fp['c1_w'] = (raw['c1_W'][:, 0, 0, 0] * s)[:, None]                 # (C, 1)
    fp['c1_b'] = (raw['c1_bias'] * s + t)[:, None]                      # (C, 1)

    # conv4_1 / conv1_4: [co, k*C + ci], stacked -> one (2C, 4C) weight (f32:
    # the gate path stays in full precision).
    s1, t1 = sf(raw['bn_41'])
    wg1 = jnp.transpose(raw['W41'][:, :, :, 0], (0, 2, 1)).reshape(C, 4 * C)
    wg1 = wg1 * s1[:, None]
    bg1 = (raw['b41'] * s1 + t1)[:, None]
    s2, t2 = sf(raw['bn_14'])
    wg2 = jnp.transpose(raw['W14'][:, :, 0, :], (0, 2, 1)).reshape(C, 4 * C)
    wg2 = wg2 * s2[:, None]
    bg2 = (raw['b14'] * s2 + t2)[:, None]
    fp['w_gates'] = jnp.concatenate([wg1, wg2], axis=0)                 # (2C, 4C) f32
    fp['b_gates'] = jnp.concatenate([bg1, bg2], axis=0)                 # (2C, 1)

    # convo (2C->C) and convo_r1 (2C->Cr) fused: (C+Cr, 2C).
    s, t = sf(raw['bn_o'])
    wo = raw['Wo'][:, :, 0, 0] * s[:, None]
    bo = (raw['bo'] * s + t)[:, None]
    s, t = sf(raw['bn_r1'])
    wr1 = raw['Wr1'][:, :, 0, 0] * s[:, None]
    br1 = (raw['br1'] * s + t)[:, None]
    fp['w_comb'] = jnp.concatenate([wo, wr1], axis=0).astype(jnp.bfloat16)
    fp['b_comb'] = jnp.concatenate([bo, br1], axis=0)                   # (C+Cr, 1)

    # conv3 (3x3): im2col weight [co, (dh*3+dw)*Cr + ci].
    s, t = sf(raw['bn_3'])
    Cr = raw['W3'].shape[0]
    w3 = jnp.transpose(raw['W3'], (0, 2, 3, 1)).reshape(Cr, 9 * Cr)
    fp['w3'] = (w3 * s[:, None]).astype(jnp.bfloat16)                   # (Cr, 9Cr)
    fp['b3'] = (raw['b3'] * s + t)[:, None]                             # (Cr, 1)

    # convo_r2 (Cr->C).
    s, t = sf(raw['bn_r2'])
    fp['wr2'] = (raw['Wr2'][:, :, 0, 0] * s[:, None]).astype(jnp.bfloat16)
    fp['br2'] = (raw['br2'] * s + t)[:, None]                           # (C, 1)
    return fp


# --------------------------------------------------------------------------
# Pure-JAX reference (NCHW, eval-mode BN, f32) used only for a correctness check.
# --------------------------------------------------------------------------
def bfa_reference(x, edge, p):
    def bn(y, bnp):
        g, be, m, v = bnp
        s = g / jnp.sqrt(v + _BN_EPS)
        return y * s[None, :, None, None] + (be - m * s)[None, :, None, None]

    def conv(y, w, b=None, padding=((0, 0), (0, 0))):
        out = lax.conv_general_dilated(
            y, w, (1, 1), padding,
            dimension_numbers=('NCHW', 'OIHW', 'NCHW'),
            precision=lax.Precision.HIGHEST)
        if b is not None:
            out = out + b[None, :, None, None]
        return out

    silu = _silu
    x_a = jnp.mean(x, axis=(2, 3), keepdims=True)
    x_m = jnp.max(x, axis=(2, 3), keepdims=True)
    ef = silu(bn(conv(edge, p['c1_W'], p['c1_bias']), p['bn_c1']))
    e_a = jnp.mean(ef, axis=(2, 3), keepdims=True)
    e_m = jnp.max(ef, axis=(2, 3), keepdims=True)
    cat_h = jnp.concatenate([x_a, e_a, x_m, e_m], axis=2)
    cat_w = jnp.concatenate([x_a, e_a, x_m, e_m], axis=3)
    w1 = jax.nn.sigmoid(jnp.maximum(bn(conv(cat_h, p['W41'], p['b41']), p['bn_41']), 0.0))
    w2 = jax.nn.sigmoid(jnp.maximum(bn(conv(cat_w, p['W14'], p['b14']), p['bn_14']), 0.0))
    x_r = x + ef * w1
    e_r = ef + x * w2
    o = jnp.concatenate([x_r, e_r], axis=1)
    b1 = silu(bn(conv(o, p['Wo'], p['bo']), p['bn_o']))
    t1 = silu(bn(conv(o, p['Wr1'], p['br1']), p['bn_r1']))
    t2 = silu(bn(conv(t1, p['W3'], p['b3'], ((1, 1), (1, 1))), p['bn_3']))
    b2 = silu(bn(conv(t2, p['Wr2'], p['br2']), p['bn_r2']))
    return b1 + b2


if __name__ == "__main__":
    # N=4 so the kernel runs with B=2 images per grid step and a 2-step grid
    # (exercises the batched path and keeps both v7x TensorCores busy).
    N, C, H, W, r = 4, 16, 16, 16, 2
    key = jax.random.PRNGKey(0)
    kx, ke, kp = jax.random.split(key, 3)
    x = jax.random.normal(kx, (N, C, H, W), jnp.float32)
    edge = jax.random.normal(ke, (N, 1, H, W), jnp.float32)

    raw = init_raw_params(C, r, kp)
    fp = fold_params(raw, C)

    out = jax.block_until_ready(bfa_forward(x, edge, fp))

    ref = bfa_reference(x, edge, raw)
    err = float(jnp.max(jnp.abs(out - ref)))
    scale = float(jnp.max(jnp.abs(ref)))
    assert out.shape == (N, C, H, W)
    assert bool(jnp.all(jnp.isfinite(out)))
    # convo / conv3 / convo_r2 use bf16 MXU inputs with f32 accumulation (the
    # gate path is full f32); validate with a scale-aware bound against the
    # f32 (HIGHEST-precision) reference.
    assert err <= 1e-2 * max(1.0, scale) + 1e-3, (
        f"max abs err {err} (ref scale {scale})")
    print("KERNEL_OK")
</pallas_src>

<mosaic_0001>
module attributes {stable_mosaic.version = 11 : i64} {
  func.func @_bfa_kernel(%arg0: i32, %arg1: memref<2x16x256xf32, #tpu.memory_space<vmem>>, %arg2: memref<2x1x256xf32, #tpu.memory_space<vmem>>, %arg3: memref<16x1xf32, #tpu.memory_space<vmem>>, %arg4: memref<16x1xf32, #tpu.memory_space<vmem>>, %arg5: memref<32x64xf32, #tpu.memory_space<vmem>>, %arg6: memref<32x1xf32, #tpu.memory_space<vmem>>, %arg7: memref<32x32xbf16, #tpu.memory_space<vmem>>, %arg8: memref<32x1xf32, #tpu.memory_space<vmem>>, %arg9: memref<16x144xbf16, #tpu.memory_space<vmem>>, %arg10: memref<16x1xf32, #tpu.memory_space<vmem>>, %arg11: memref<16x16xbf16, #tpu.memory_space<vmem>>, %arg12: memref<16x1xf32, #tpu.memory_space<vmem>>, %arg13: memref<9x1x512xbf16, #tpu.memory_space<vmem>>, %arg14: memref<2x16x256xf32, #tpu.memory_space<vmem>>, %arg15: memref<16x512xf32, #tpu.memory_space<vmem>>, %arg16: memref<32x512xbf16, #tpu.memory_space<vmem>>, %arg17: memref<144x512xbf16, #tpu.memory_space<vmem>>) attributes {dimension_semantics = [#tpu.dimension_semantics<parallel>], iteration_bounds = array<i64: 2>, scalar_prefetch = 0 : i64, scratch_operands = 3 : i64, tpu.core_type = #tpu.core_type<tc>, window_params = [{transform_indices = @transform_0, window_bounds = array<i64: 2, 16, 256>}, {transform_indices = @transform_1, window_bounds = array<i64: 2, 1, 256>}, {pipeline_mode = #tpu.pipeline_mode<synchronous>, transform_indices = @transform_2, window_bounds = array<i64: 16, 1>}, {pipeline_mode = #tpu.pipeline_mode<synchronous>, transform_indices = @transform_3, window_bounds = array<i64: 16, 1>}, {pipeline_mode = #tpu.pipeline_mode<synchronous>, transform_indices = @transform_4, window_bounds = array<i64: 32, 64>}, {pipeline_mode = #tpu.pipeline_mode<synchronous>, transform_indices = @transform_5, window_bounds = array<i64: 32, 1>}, {pipeline_mode = #tpu.pipeline_mode<synchronous>, transform_indices = @transform_6, window_bounds = array<i64: 32, 32>}, {pipeline_mode = #tpu.pipeline_mode<synchronous>, transform_indices = @transform_7, window_bounds = array<i64: 32, 1>}, {pipeline_mode = #tpu.pipeline_mode<synchronous>, transform_indices = @transform_8, window_bounds = array<i64: 16, 144>}, {pipeline_mode = #tpu.pipeline_mode<synchronous>, transform_indices = @transform_9, window_bounds = array<i64: 16, 1>}, {pipeline_mode = #tpu.pipeline_mode<synchronous>, transform_indices = @transform_10, window_bounds = array<i64: 16, 16>}, {pipeline_mode = #tpu.pipeline_mode<synchronous>, transform_indices = @transform_11, window_bounds = array<i64: 16, 1>}, {pipeline_mode = #tpu.pipeline_mode<synchronous>, transform_indices = @transform_12, window_bounds = array<i64: 9, 1, 512>}, {transform_indices = @transform_13, window_bounds = array<i64: 2, 16, 256>}]} {
    %c0 = arith.constant 0 : index
    %c0_0 = arith.constant 0 : index
    %0 = vector.load %arg3[%c0, %c0_0] : memref<16x1xf32, #tpu.memory_space<vmem>>, vector<16x1xf32>
    %c0_1 = arith.constant 0 : index
    %c0_2 = arith.constant 0 : index
    %1 = vector.load %arg4[%c0_1, %c0_2] : memref<16x1xf32, #tpu.memory_space<vmem>>, vector<16x1xf32>
    %c0_3 = arith.constant 0 : index
    %c0_4 = arith.constant 0 : index
    %c0_5 = arith.constant 0 : index
    %2 = vector.load %arg1[%c0_3, %c0_4, %c0_5] : memref<2x16x256xf32, #tpu.memory_space<vmem>>, vector<1x16x256xf32>
    %3 = vector.shape_cast %2 : vector<1x16x256xf32> to vector<16x256xf32>
    %c0_6 = arith.constant 0 : index
    %c0_7 = arith.constant 0 : index
    %c0_8 = arith.constant 0 : index
    %4 = vector.load %arg2[%c0_6, %c0_7, %c0_8] : memref<2x1x256xf32, #tpu.memory_space<vmem>>, vector<1x1x256xf32>
    %5 = vector.shape_cast %4 : vector<1x1x256xf32> to vector<1x256xf32>
    %6 = vector.broadcast %0 : vector<16x1xf32> to vector<16x256xf32>
    %7 = vector.broadcast %5 : vector<1x256xf32> to vector<16x256xf32>
    %8 = arith.mulf %6, %7 : vector<16x256xf32>
    %9 = vector.broadcast %1 : vector<16x1xf32> to vector<16x256xf32>
    %10 = arith.addf %8, %9 : vector<16x256xf32>
    %11 = arith.negf %10 : vector<16x256xf32>
    %12 = math.exp %11 : vector<16x256xf32>
    %cst = arith.constant 1.000000e+00 : f32
    %13 = vector.broadcast %cst : f32 to vector<16x256xf32>
    %14 = arith.addf %13, %12 : vector<16x256xf32>
    %15 = arith.divf %13, %14 : vector<16x256xf32>
    %16 = arith.mulf %10, %15 : vector<16x256xf32>
    %c0_9 = arith.constant 0 : index
    %c0_10 = arith.constant 0 : index
    %17 = vector.load %arg15[%c0_9, %c0_10] : memref<16x512xf32, #tpu.memory_space<vmem>>, vector<16x256xf32>
    tpu.vector_store %arg15[%c0_9, %c0_10], %16 {strides = array<i32>} : memref<16x512xf32, #tpu.memory_space<vmem>>, vector<16x256xf32>,
    %cst_11 = arith.constant dense<0.000000e+00> : vector<16xf32>
    %18 = vector.multi_reduction <add>, %3, %cst_11 [1] : vector<16x256xf32> to vector<16xf32>
    %19 = vector.shape_cast %18 : vector<16xf32> to vector<16x1xf32>
    %cst_12 = arith.constant 2.560000e+02 : f32
    %20 = vector.broadcast %cst_12 : f32 to vector<16x1xf32>
    %21 = arith.divf %19, %20 : vector<16x1xf32>
    %cst_13 = arith.constant dense<0xFF800000> : vector<16xf32>
    %22 = vector.multi_reduction <maximumf>, %3, %cst_13 [1] : vector<16x256xf32> to vector<16xf32>
    %23 = vector.shape_cast %22 : vector<16xf32> to vector<16x1xf32>
    %cst_14 = arith.constant dense<0.000000e+00> : vector<16xf32>
    %24 = vector.multi_reduction <add>, %16, %cst_14 [1] : vector<16x256xf32> to vector<16xf32>
    %25 = vector.shape_cast %24 : vector<16xf32> to vector<16x1xf32>
    %cst_15 = arith.constant 2.560000e+02 : f32
    %26 = vector.broadcast %cst_15 : f32 to vector<16x1xf32>
    %27 = arith.divf %25, %26 : vector<16x1xf32>
    %cst_16 = arith.constant dense<0xFF800000> : vector<16xf32>
    %28 = vector.multi_reduction <maximumf>, %16, %cst_16 [1] : vector<16x256xf32> to vector<16xf32>
    %29 = vector.shape_cast %28 : vector<16xf32> to vector<16x1xf32>
    %30 = tpu.concatenate %21, %27, %23, %29 in 0 : vector<16x1xf32>, vector<16x1xf32>, vector<16x1xf32>, vector<16x1xf32> -> vector<64x1xf32>
    %c1 = arith.constant 1 : index
    %c0_17 = arith.constant 0 : index
    %c0_18 = arith.constant 0 : index
    %31 = vector.load %arg1[%c1, %c0_17, %c0_18] : memref<2x16x256xf32, #tpu.memory_space<vmem>>, vector<1x16x256xf32>
    %32 = vector.shape_cast %31 : vector<1x16x256xf32> to vector<16x256xf32>
    %c1_19 = arith.constant 1 : index
    %c0_20 = arith.constant 0 : index
    %c0_21 = arith.constant 0 : index
    %33 = vector.load %arg2[%c1_19, %c0_20, %c0_21] : memref<2x1x256xf32, #tpu.memory_space<vmem>>, vector<1x1x256xf32>
    %34 = vector.shape_cast %33 : vector<1x1x256xf32> to vector<1x256xf32>
    %35 = vector.broadcast %0 : vector<16x1xf32> to vector<16x256xf32>
    %36 = vector.broadcast %34 : vector<1x256xf32> to vector<16x256xf32>
    %37 = arith.mulf %35, %36 : vector<16x256xf32>
    %38 = vector.broadcast %1 : vector<16x1xf32> to vector<16x256xf32>
    %39 = arith.addf %37, %38 : vector<16x256xf32>
    %40 = arith.negf %39 : vector<16x256xf32>
    %41 = math.exp %40 : vector<16x256xf32>
    %cst_22 = arith.constant 1.000000e+00 : f32
    %42 = vector.broadcast %cst_22 : f32 to vector<16x256xf32>
    %43 = arith.addf %42, %41 : vector<16x256xf32>
    %44 = arith.divf %42, %43 : vector<16x256xf32>
    %45 = arith.mulf %39, %44 : vector<16x256xf32>
    %c0_23 = arith.constant 0 : index
    %c256 = arith.constant 256 : index
    %46 = vector.load %arg15[%c0_23, %c256] : memref<16x512xf32, #tpu.memory_space<vmem>>, vector<16x256xf32>
    tpu.vector_store %arg15[%c0_23, %c256], %45 {strides = array<i32>} : memref<16x512xf32, #tpu.memory_space<vmem>>, vector<16x256xf32>,
    %cst_24 = arith.constant dense<0.000000e+00> : vector<16xf32>
    %47 = vector.multi_reduction <add>, %32, %cst_24 [1] : vector<16x256xf32> to vector<16xf32>
    %48 = vector.shape_cast %47 : vector<16xf32> to vector<16x1xf32>
    %cst_25 = arith.constant 2.560000e+02 : f32
    %49 = vector.broadcast %cst_25 : f32 to vector<16x1xf32>
    %50 = arith.divf %48, %49 : vector<16x1xf32>
    %cst_26 = arith.constant dense<0xFF800000> : vector<16xf32>
    %51 = vector.multi_reduction <maximumf>, %32, %cst_26 [1] : vector<16x256xf32> to vector<16xf32>
    %52 = vector.shape_cast %51 : vector<16xf32> to vector<16x1xf32>
    %cst_27 = arith.constant dense<0.000000e+00> : vector<16xf32>
    %53 = vector.multi_reduction <add>, %45, %cst_27 [1] : vector<16x256xf32> to vector<16xf32>
    %54 = vector.shape_cast %53 : vector<16xf32> to vector<16x1xf32>
    %cst_28 = arith.constant 2.560000e+02 : f32
    %55 = vector.broadcast %cst_28 : f32 to vector<16x1xf32>
    %56 = arith.divf %54, %55 : vector<16x1xf32>
    %cst_29 = arith.constant dense<0xFF800000> : vector<16xf32>
    %57 = vector.multi_reduction <maximumf>, %45, %cst_29 [1] : vector<16x256xf32> to vector<16xf32>
    %58 = vector.shape_cast %57 : vector<16xf32> to vector<16x1xf32>
    %59 = tpu.concatenate %50, %56, %52, %58 in 0 : vector<16x1xf32>, vector<16x1xf32>, vector<16x1xf32>, vector<16x1xf32> -> vector<64x1xf32>
    %60 = tpu.concatenate %30, %59 in 1 : vector<64x1xf32>, vector<64x1xf32> -> vector<64x2xf32>
    %c0_30 = arith.constant 0 : index
    %c0_31 = arith.constant 0 : index
    %61 = vector.load %arg5[%c0_30, %c0_31] : memref<32x64xf32, #tpu.memory_space<vmem>>, vector<32x64xf32>
    %cst_32 = arith.constant dense<0.000000e+00> : vector<32x2xf32>
    %62 = tpu.matmul %61, %60, %cst_32 {dimension_numbers = #tpu.dot_dimension_numbers<[1], [0], [0], [1], [0, 0, 1, 1], [], []>} : vector<32x64xf32>, vector<64x2xf32>, vector<32x2xf32> -> vector<32x2xf32>
    %c0_33 = arith.constant 0 : index
    %c0_34 = arith.constant 0 : index
    %63 = vector.load %arg6[%c0_33, %c0_34] : memref<32x1xf32, #tpu.memory_space<vmem>>, vector<32x1xf32>
    %64 = vector.broadcast %63 : vector<32x1xf32> to vector<32x2xf32>
    %65 = arith.addf %62, %64 : vector<32x2xf32>
    %cst_35 = arith.constant 0.000000e+00 : f32
    %66 = vector.broadcast %cst_35 : f32 to vector<32x2xf32>
    %67 = arith.maximumf %65, %66 : vector<32x2xf32>
    %68 = arith.negf %67 : vector<32x2xf32>
    %69 = math.exp %68 : vector<32x2xf32>
    %cst_36 = arith.constant 1.000000e+00 : f32
    %70 = vector.broadcast %cst_36 : f32 to vector<32x2xf32>
    %71 = arith.addf %70, %69 : vector<32x2xf32>
    %72 = arith.divf %70, %71 : vector<32x2xf32>
    %73 = vector.extract_strided_slice %72 {offsets = [0, 0], sizes = [16, 2], strides = [1, 1]} : vector<32x2xf32> to vector<16x2xf32>
    %74 = vector.extract_strided_slice %72 {offsets = [16, 0], sizes = [16, 2], strides = [1, 1]} : vector<32x2xf32> to vector<16x2xf32>
    %c0_37 = arith.constant 0 : index
    %c0_38 = arith.constant 0 : index
    %c0_39 = arith.constant 0 : index
    %75 = vector.load %arg1[%c0_37, %c0_38, %c0_39] : memref<2x16x256xf32, #tpu.memory_space<vmem>>, vector<1x16x256xf32>
    %76 = vector.shape_cast %75 : vector<1x16x256xf32> to vector<16x256xf32>
    %c0_40 = arith.constant 0 : index
    %c0_41 = arith.constant 0 : index
    %77 = vector.load %arg15[%c0_40, %c0_41] : memref<16x512xf32, #tpu.memory_space<vmem>>, vector<16x256xf32>
    %78 = vector.extract_strided_slice %73 {offsets = [0, 0], sizes = [16, 1], strides = [1, 1]} : vector<16x2xf32> to vector<16x1xf32>
    %79 = vector.extract_strided_slice %74 {offsets = [0, 0], sizes = [16, 1], strides = [1, 1]} : vector<16x2xf32> to vector<16x1xf32>
    %80 = vector.broadcast %78 : vector<16x1xf32> to vector<16x256xf32>
    %81 = arith.mulf %77, %80 : vector<16x256xf32>
    %82 = arith.addf %76, %81 : vector<16x256xf32>
    %83 = arith.truncf %82 : vector<16x256xf32> to vector<16x256xbf16>
    %c0_42 = arith.constant 0 : index
    %c0_43 = arith.constant 0 : index
    %84 = vector.load %arg16[%c0_42, %c0_43] : memref<32x512xbf16, #tpu.memory_space<vmem>>, vector<16x256xbf16>
    tpu.vector_store %arg16[%c0_42, %c0_43], %83 {strides = array<i32>} : memref<32x512xbf16, #tpu.memory_space<vmem>>, vector<16x256xbf16>,
    %85 = vector.broadcast %79 : vector<16x1xf32> to vector<16x256xf32>
    %86 = arith.mulf %76, %85 : vector<16x256xf32>
    %87 = arith.addf %77, %86 : vector<16x256xf32>
    %88 = arith.truncf %87 : vector<16x256xf32> to vector<16x256xbf16>
    %c16 = arith.constant 16 : index
    %c0_44 = arith.constant 0 : index
    %89 = vector.load %arg16[%c16, %c0_44] : memref<32x512xbf16, #tpu.memory_space<vmem>>, vector<16x256xbf16>
    tpu.vector_store %arg16[%c16, %c0_44], %88 {strides = array<i32>} : memref<32x512xbf16, #tpu.memory_space<vmem>>, vector<16x256xbf16>,
    %c1_45 = arith.constant 1 : index
    %c0_46 = arith.constant 0 : index
    %c0_47 = arith.constant 0 : index
    %90 = vector.load %arg1[%c1_45, %c0_46, %c0_47] : memref<2x16x256xf32, #tpu.memory_space<vmem>>, vector<1x16x256xf32>
    %91 = vector.shape_cast %90 : vector<1x16x256xf32> to vector<16x256xf32>
    %c0_48 = arith.constant 0 : index
    %c256_49 = arith.constant 256 : index
    %92 = vector.load %arg15[%c0_48, %c256_49] : memref<16x512xf32, #tpu.memory_space<vmem>>, vector<16x256xf32>
    %93 = vector.extract_strided_slice %73 {offsets = [0, 1], sizes = [16, 1], strides = [1, 1]} : vector<16x2xf32> to vector<16x1xf32>
    %94 = vector.extract_strided_slice %74 {offsets = [0, 1], sizes = [16, 1], strides = [1, 1]} : vector<16x2xf32> to vector<16x1xf32>
    %95 = vector.broadcast %93 : vector<16x1xf32> to vector<16x256xf32>
    %96 = arith.mulf %92, %95 : vector<16x256xf32>
    %97 = arith.addf %91, %96 : vector<16x256xf32>
    %98 = arith.truncf %97 : vector<16x256xf32> to vector<16x256xbf16>
    %c0_50 = arith.constant 0 : index
    %c256_51 = arith.constant 256 : index
    %99 = vector.load %arg16[%c0_50, %c256_51] : memref<32x512xbf16, #tpu.memory_space<vmem>>, vector<16x256xbf16>
    tpu.vector_store %arg16[%c0_50, %c256_51], %98 {strides = array<i32>} : memref<32x512xbf16, #tpu.memory_space<vmem>>, vector<16x256xbf16>,
    %100 = vector.broadcast %94 : vector<16x1xf32> to vector<16x256xf32>
    %101 = arith.mulf %91, %100 : vector<16x256xf32>
    %102 = arith.addf %92, %101 : vector<16x256xf32>
    %103 = arith.truncf %102 : vector<16x256xf32> to vector<16x256xbf16>
    %c16_52 = arith.constant 16 : index
    %c256_53 = arith.constant 256 : index
    %104 = vector.load %arg16[%c16_52, %c256_53] : memref<32x512xbf16, #tpu.memory_space<vmem>>, vector<16x256xbf16>
    tpu.vector_store %arg16[%c16_52, %c256_53], %103 {strides = array<i32>} : memref<32x512xbf16, #tpu.memory_space<vmem>>, vector<16x256xbf16>,
    %c0_54 = arith.constant 0 : index
    %c0_55 = arith.constant 0 : index
    %105 = vector.load %arg7[%c0_54, %c0_55] : memref<32x32xbf16, #tpu.memory_space<vmem>>, vector<32x32xbf16>
    %c0_56 = arith.constant 0 : index
    %c0_57 = arith.constant 0 : index
    %106 = vector.load %arg16[%c0_56, %c0_57] : memref<32x512xbf16, #tpu.memory_space<vmem>>, vector<32x512xbf16>
    %cst_58 = arith.constant dense<0.000000e+00> : vector<32x512xf32>
    %107 = tpu.matmul %105, %106, %cst_58 {dimension_numbers = #tpu.dot_dimension_numbers<[1], [0], [0], [1], [0, 0, 1, 1], [], []>} : vector<32x32xbf16>, vector<32x512xbf16>, vector<32x512xf32> -> vector<32x512xf32>
    %c0_59 = arith.constant 0 : index
    %c0_60 = arith.constant 0 : index
    %108 = vector.load %arg8[%c0_59, %c0_60] : memref<32x1xf32, #tpu.memory_space<vmem>>, vector<32x1xf32>
    %109 = vector.broadcast %108 : vector<32x1xf32> to vector<32x512xf32>
    %110 = arith.addf %107, %109 : vector<32x512xf32>
    %111 = vector.extract_strided_slice %110 {offsets = [0, 0], sizes = [16, 512], strides = [1, 1]} : vector<32x512xf32> to vector<16x512xf32>
    %112 = arith.negf %111 : vector<16x512xf32>
    %113 = math.exp %112 : vector<16x512xf32>
    %cst_61 = arith.constant 1.000000e+00 : f32
    %114 = vector.broadcast %cst_61 : f32 to vector<16x512xf32>
    %115 = arith.addf %114, %113 : vector<16x512xf32>
    %116 = arith.divf %114, %115 : vector<16x512xf32>
    %117 = arith.mulf %111, %116 : vector<16x512xf32>
    %118 = vector.extract_strided_slice %110 {offsets = [16, 0], sizes = [16, 512], strides = [1, 1]} : vector<32x512xf32> to vector<16x512xf32>
    %119 = arith.negf %118 : vector<16x512xf32>
    %120 = math.exp %119 : vector<16x512xf32>
    %cst_62 = arith.constant 1.000000e+00 : f32
    %121 = vector.broadcast %cst_62 : f32 to vector<16x512xf32>
    %122 = arith.addf %121, %120 : vector<16x512xf32>
    %123 = arith.divf %121, %122 : vector<16x512xf32>
    %124 = arith.mulf %118, %123 : vector<16x512xf32>
    %c17_i32 = arith.constant 17 : i32
    %125 = tpu.dynamic_rotate %124 by %c17_i32 dim 1 : vector<16x512xf32>, i32 -> vector<16x512xf32>
    %126 = arith.truncf %125 : vector<16x512xf32> to vector<16x512xbf16>
    %c0_63 = arith.constant 0 : index
    %c0_64 = arith.constant 0 : index
    %c0_65 = arith.constant 0 : index
    %127 = vector.load %arg13[%c0_63, %c0_64, %c0_65] : memref<9x1x512xbf16, #tpu.memory_space<vmem>>, vector<1x1x512xbf16>
    %128 = vector.shape_cast %127 : vector<1x1x512xbf16> to vector<1x512xbf16>
    %129 = vector.broadcast %128 : vector<1x512xbf16> to vector<16x512xbf16>
    %130 = arith.mulf %126, %129 : vector<16x512xbf16>
    %c0_66 = arith.constant 0 : index
    %c0_67 = arith.constant 0 : index
    %131 = vector.load %arg17[%c0_66, %c0_67] : memref<144x512xbf16, #tpu.memory_space<vmem>>, vector<16x512xbf16>
    tpu.vector_store %arg17[%c0_66, %c0_67], %130 {strides = array<i32>} : memref<144x512xbf16, #tpu.memory_space<vmem>>, vector<16x512xbf16>,
    %c16_i32 = arith.constant 16 : i32
    %132 = tpu.dynamic_rotate %124 by %c16_i32 dim 1 : vector<16x512xf32>, i32 -> vector<16x512xf32>
    %133 = arith.truncf %132 : vector<16x512xf32> to vector<16x512xbf16>
    %c1_68 = arith.constant 1 : index
    %c0_69 = arith.constant 0 : index
    %c0_70 = arith.constant 0 : index
    %134 = vector.load %arg13[%c1_68, %c0_69, %c0_70] : memref<9x1x512xbf16, #tpu.memory_space<vmem>>, vector<1x1x512xbf16>
    %135 = vector.shape_cast %134 : vector<1x1x512xbf16> to vector<1x512xbf16>
    %136 = vector.broadcast %135 : vector<1x512xbf16> to vector<16x512xbf16>
    %137 = arith.mulf %133, %136 : vector<16x512xbf16>
    %c16_71 = arith.constant 16 : index
    %c0_72 = arith.constant 0 : index
    %138 = vector.load %arg17[%c16_71, %c0_72] : memref<144x512xbf16, #tpu.memory_space<vmem>>, vector<16x512xbf16>
    tpu.vector_store %arg17[%c16_71, %c0_72], %137 {strides = array<i32>} : memref<144x512xbf16, #tpu.memory_space<vmem>>, vector<16x512xbf16>,
    %c15_i32 = arith.constant 15 : i32
    %139 = tpu.dynamic_rotate %124 by %c15_i32 dim 1 : vector<16x512xf32>, i32 -> vector<16x512xf32>
    %140 = arith.truncf %139 : vector<16x512xf32> to vector<16x512xbf16>
    %c2 = arith.constant 2 : index
    %c0_73 = arith.constant 0 : index
    %c0_74 = arith.constant 0 : index
    %141 = vector.load %arg13[%c2, %c0_73, %c0_74] : memref<9x1x512xbf16, #tpu.memory_space<vmem>>, vector<1x1x512xbf16>
    %142 = vector.shape_cast %141 : vector<1x1x512xbf16> to vector<1x512xbf16>
    %143 = vector.broadcast %142 : vector<1x512xbf16> to vector<16x512xbf16>
    %144 = arith.mulf %140, %143 : vector<16x512xbf16>
    %c32 = arith.constant 32 : index
    %c0_75 = arith.constant 0 : index
    %145 = vector.load %arg17[%c32, %c0_75] : memref<144x512xbf16, #tpu.memory_space<vmem>>, vector<16x512xbf16>
    tpu.vector_store %arg17[%c32, %c0_75], %144 {strides = array<i32>} : memref<144x512xbf16, #tpu.memory_space<vmem>>, vector<16x512xbf16>,
    %c1_i32 = arith.constant 1 : i32
    %146 = tpu.dynamic_rotate %124 by %c1_i32 dim 1 : vector<16x512xf32>, i32 -> vector<16x512xf32>
    %147 = arith.truncf %146 : vector<16x512xf32> to vector<16x512xbf16>
    %c3 = arith.constant 3 : index
    %c0_76 = arith.constant 0 : index
    %c0_77 = arith.constant 0 : index
    %148 = vector.load %arg13[%c3, %c0_76, %c0_77] : memref<9x1x512xbf16, #tpu.memory_space<vmem>>, vector<1x1x512xbf16>
    %149 = vector.shape_cast %148 : vector<1x1x512xbf16> to vector<1x512xbf16>
    %150 = vector.broadcast %149 : vector<1x512xbf16> to vector<16x512xbf16>
    %151 = arith.mulf %147, %150 : vector<16x512xbf16>
    %c48 = arith.constant 48 : index
    %c0_78 = arith.constant 0 : index
    %152 = vector.load %arg17[%c48, %c0_78] : memref<144x512xbf16, #tpu.memory_space<vmem>>, vector<16x512xbf16>
    tpu.vector_store %arg17[%c48, %c0_78], %151 {strides = array<i32>} : memref<144x512xbf16, #tpu.memory_space<vmem>>, vector<16x512xbf16>,
    %153 = arith.truncf %124 : vector<16x512xf32> to vector<16x512xbf16>
    %c64 = arith.constant 64 : index
    %c0_79 = arith.constant 0 : index
    %154 = vector.load %arg17[%c64, %c0_79] : memref<144x512xbf16, #tpu.memory_space<vmem>>, vector<16x512xbf16>
    tpu.vector_store %arg17[%c64, %c0_79], %153 {strides = array<i32>} : memref<144x512xbf16, #tpu.memory_space<vmem>>, vector<16x512xbf16>,
    %c511_i32 = arith.constant 511 : i32
    %155 = tpu.dynamic_rotate %124 by %c511_i32 dim 1 : vector<16x512xf32>, i32 -> vector<16x512xf32>
    %156 = arith.truncf %155 : vector<16x512xf32> to vector<16x512xbf16>
    %c5 = arith.constant 5 : index
    %c0_80 = arith.constant 0 : index
    %c0_81 = arith.constant 0 : index
    %157 = vector.load %arg13[%c5, %c0_80, %c0_81] : memref<9x1x512xbf16, #tpu.memory_space<vmem>>, vector<1x1x512xbf16>
    %158 = vector.shape_cast %157 : vector<1x1x512xbf16> to vector<1x512xbf16>
    %159 = vector.broadcast %158 : vector<1x512xbf16> to vector<16x512xbf16>
    %160 = arith.mulf %156, %159 : vector<16x512xbf16>
    %c80 = arith.constant 80 : index
    %c0_82 = arith.constant 0 : index
    %161 = vector.load %arg17[%c80, %c0_82] : memref<144x512xbf16, #tpu.memory_space<vmem>>, vector<16x512xbf16>
    tpu.vector_store %arg17[%c80, %c0_82], %160 {strides = array<i32>} : memref<144x512xbf16, #tpu.memory_space<vmem>>, vector<16x512xbf16>,
    %c497_i32 = arith.constant 497 : i32
    %162 = tpu.dynamic_rotate %124 by %c497_i32 dim 1 : vector<16x512xf32>, i32 -> vector<16x512xf32>
    %163 = arith.truncf %162 : vector<16x512xf32> to vector<16x512xbf16>
    %c6 = arith.constant 6 : index
    %c0_83 = arith.constant 0 : index
    %c0_84 = arith.constant 0 : index
    %164 = vector.load %arg13[%c6, %c0_83, %c0_84] : memref<9x1x512xbf16, #tpu.memory_space<vmem>>, vector<1x1x512xbf16>
    %165 = vector.shape_cast %164 : vector<1x1x512xbf16> to vector<1x512xbf16>
    %166 = vector.broadcast %165 : vector<1x512xbf16> to vector<16x512xbf16>
    %167 = arith.mulf %163, %166 : vector<16x512xbf16>
    %c96 = arith.constant 96 : index
    %c0_85 = arith.constant 0 : index
    %168 = vector.load %arg17[%c96, %c0_85] : memref<144x512xbf16, #tpu.memory_space<vmem>>, vector<16x512xbf16>
    tpu.vector_store %arg17[%c96, %c0_85], %167 {strides = array<i32>} : memref<144x512xbf16, #tpu.memory_space<vmem>>, vector<16x512xbf16>,
    %c496_i32 = arith.constant 496 : i32
    %169 = tpu.dynamic_rotate %124 by %c496_i32 dim 1 : vector<16x512xf32>, i32 -> vector<16x512xf32>
    %170 = arith.truncf %169 : vector<16x512xf32> to vector<16x512xbf16>
    %c7 = arith.constant 7 : index
    %c0_86 = arith.constant 0 : index
    %c0_87 = arith.constant 0 : index
    %171 = vector.load %arg13[%c7, %c0_86, %c0_87] : memref<9x1x512xbf16, #tpu.memory_space<vmem>>, vector<1x1x512xbf16>
    %172 = vector.shape_cast %171 : vector<1x1x512xbf16> to vector<1x512xbf16>
    %173 = vector.broadcast %172 : vector<1x512xbf16> to vector<16x512xbf16>
    %174 = arith.mulf %170, %173 : vector<16x512xbf16>
    %c112 = arith.constant 112 : index
    %c0_88 = arith.constant 0 : index
    %175 = vector.load %arg17[%c112, %c0_88] : memref<144x512xbf16, #tpu.memory_space<vmem>>, vector<16x512xbf16>
    tpu.vector_store %arg17[%c112, %c0_88], %174 {strides = array<i32>} : memref<144x512xbf16, #tpu.memory_space<vmem>>, vector<16x512xbf16>,
    %c495_i32 = arith.constant 495 : i32
    %176 = tpu.dynamic_rotate %124 by %c495_i32 dim 1 : vector<16x512xf32>, i32 -> vector<16x512xf32>
    %177 = arith.truncf %176 : vector<16x512xf32> to vector<16x512xbf16>
    %c8 = arith.constant 8 : index
    %c0_89 = arith.constant 0 : index
    %c0_90 = arith.constant 0 : index
    %178 = vector.load %arg13[%c8, %c0_89, %c0_90] : memref<9x1x512xbf16, #tpu.memory_space<vmem>>, vector<1x1x512xbf16>
    %179 = vector.shape_cast %178 : vector<1x1x512xbf16> to vector<1x512xbf16>
    %180 = vector.broadcast %179 : vector<1x512xbf16> to vector<16x512xbf16>
    %181 = arith.mulf %177, %180 : vector<16x512xbf16>
    %c128 = arith.constant 128 : index
    %c0_91 = arith.constant 0 : index
    %182 = vector.load %arg17[%c128, %c0_91] : memref<144x512xbf16, #tpu.memory_space<vmem>>, vector<16x512xbf16>
    tpu.vector_store %arg17[%c128, %c0_91], %181 {strides = array<i32>} : memref<144x512xbf16, #tpu.memory_space<vmem>>, vector<16x512xbf16>,
    %c0_92 = arith.constant 0 : index
    %c0_93 = arith.constant 0 : index
    %183 = vector.load %arg9[%c0_92, %c0_93] : memref<16x144xbf16, #tpu.memory_space<vmem>>, vector<16x144xbf16>
    %c0_94 = arith.constant 0 : index
    %c0_95 = arith.constant 0 : index
    %184 = vector.load %arg17[%c0_94, %c0_95] : memref<144x512xbf16, #tpu.memory_space<vmem>>, vector<144x512xbf16>
    %cst_96 = arith.constant dense<0.000000e+00> : vector<16x512xf32>
    %185 = tpu.matmul %183, %184, %cst_96 {dimension_numbers = #tpu.dot_dimension_numbers<[1], [0], [0], [1], [0, 0, 1, 1], [], []>} : vector<16x144xbf16>, vector<144x512xbf16>, vector<16x512xf32> -> vector<16x512xf32>
    %c0_97 = arith.constant 0 : index
    %c0_98 = arith.constant 0 : index
    %186 = vector.load %arg10[%c0_97, %c0_98] : memref<16x1xf32, #tpu.memory_space<vmem>>, vector<16x1xf32>
    %187 = vector.broadcast %186 : vector<16x1xf32> to vector<16x512xf32>
    %188 = arith.addf %185, %187 : vector<16x512xf32>
    %189 = arith.negf %188 : vector<16x512xf32>
    %190 = math.exp %189 : vector<16x512xf32>
    %cst_99 = arith.constant 1.000000e+00 : f32
    %191 = vector.broadcast %cst_99 : f32 to vector<16x512xf32>
    %192 = arith.addf %191, %190 : vector<16x512xf32>
    %193 = arith.divf %191, %192 : vector<16x512xf32>
    %194 = arith.mulf %188, %193 : vector<16x512xf32>
    %c0_100 = arith.constant 0 : index
    %c0_101 = arith.constant 0 : index
    %195 = vector.load %arg11[%c0_100, %c0_101] : memref<16x16xbf16, #tpu.memory_space<vmem>>, vector<16x16xbf16>
    %196 = arith.truncf %194 : vector<16x512xf32> to vector<16x512xbf16>
    %cst_102 = arith.constant dense<0.000000e+00> : vector<16x512xf32>
    %197 = tpu.matmul %195, %196, %cst_102 {dimension_numbers = #tpu.dot_dimension_numbers<[1], [0], [0], [1], [0, 0, 1, 1], [], []>} : vector<16x16xbf16>, vector<16x512xbf16>, vector<16x512xf32> -> vector<16x512xf32>
    %c0_103 = arith.constant 0 : index
    %c0_104 = arith.constant 0 : index
    %198 = vector.load %arg12[%c0_103, %c0_104] : memref<16x1xf32, #tpu.memory_space<vmem>>, vector<16x1xf32>
    %199 = vector.broadcast %198 : vector<16x1xf32> to vector<16x512xf32>
    %200 = arith.addf %197, %199 : vector<16x512xf32>
    %201 = arith.negf %200 : vector<16x512xf32>
    %202 = math.exp %201 : vector<16x512xf32>
    %cst_105 = arith.constant 1.000000e+00 : f32
    %203 = vector.broadcast %cst_105 : f32 to vector<16x512xf32>
    %204 = arith.addf %203, %202 : vector<16x512xf32>
    %205 = arith.divf %203, %204 : vector<16x512xf32>
    %206 = arith.mulf %200, %205 : vector<16x512xf32>
    %207 = arith.addf %117, %206 : vector<16x512xf32>
    %208 = vector.extract_strided_slice %207 {offsets = [0, 0], sizes = [16, 256], strides = [1, 1]} : vector<16x512xf32> to vector<16x256xf32>
    %c0_106 = arith.constant 0 : index
    %c0_107 = arith.constant 0 : index
    %c0_108 = arith.constant 0 : index
    %209 = vector.load %arg14[%c0_106, %c0_107, %c0_108] : memref<2x16x256xf32, #tpu.memory_space<vmem>>, vector<1x16x256xf32>
    %210 = vector.shape_cast %209 : vector<1x16x256xf32> to vector<16x256xf32>
    %211 = vector.shape_cast %208 : vector<16x256xf32> to vector<1x16x256xf32>
    tpu.vector_store %arg14[%c0_106, %c0_107, %c0_108], %211 {strides = array<i32>} : memref<2x16x256xf32, #tpu.memory_space<vmem>>, vector<1x16x256xf32>,
    %212 = vector.extract_strided_slice %207 {offsets = [0, 256], sizes = [16, 256], strides = [1, 1]} : vector<16x512xf32> to vector<16x256xf32>
    %c1_109 = arith.constant 1 : index
    %c0_110 = arith.constant 0 : index
    %c0_111 = arith.constant 0 : index
    %213 = vector.load %arg14[%c1_109, %c0_110, %c0_111] : memref<2x16x256xf32, #tpu.memory_space<vmem>>, vector<1x16x256xf32>
    %214 = vector.shape_cast %213 : vector<1x16x256xf32> to vector<16x256xf32>
    %215 = vector.shape_cast %212 : vector<16x256xf32> to vector<1x16x256xf32>
    tpu.vector_store %arg14[%c1_109, %c0_110, %c0_111], %215 {strides = array<i32>} : memref<2x16x256xf32, #tpu.memory_space<vmem>>, vector<1x16x256xf32>,
    return
  }
  func.func @transform_0(%arg0: i32) -> (i32, i32, i32) {
    %c0_i32 = arith.constant 0 : i32
    %c0_i32_0 = arith.constant 0 : i32
    %c0_i32_1 = arith.constant 0 : i32
    return %arg0, %c0_i32, %c0_i32_0 : i32, i32, i32
  }
  func.func @transform_1(%arg0: i32) -> (i32, i32, i32) {
    %c0_i32 = arith.constant 0 : i32
    %c0_i32_0 = arith.constant 0 : i32
    %c0_i32_1 = arith.constant 0 : i32
    return %arg0, %c0_i32, %c0_i32_0 : i32, i32, i32
  }
  func.func @transform_2(%arg0: i32) -> (i32, i32) {
    %c0_i32 = arith.constant 0 : i32
    %c0_i32_0 = arith.constant 0 : i32
    %c0_i32_1 = arith.constant 0 : i32
    return %c0_i32, %c0_i32_0 : i32, i32
  }
  func.func @transform_3(%arg0: i32) -> (i32, i32) {
    %c0_i32 = arith.constant 0 : i32
    %c0_i32_0 = arith.constant 0 : i32
    %c0_i32_1 = arith.constant 0 : i32
    return %c0_i32, %c0_i32_0 : i32, i32
  }
  func.func @transform_4(%arg0: i32) -> (i32, i32) {
    %c0_i32 = arith.constant 0 : i32
    %c0_i32_0 = arith.constant 0 : i32
    %c0_i32_1 = arith.constant 0 : i32
    return %c0_i32, %c0_i32_0 : i32, i32
  }
  func.func @transform_5(%arg0: i32) -> (i32, i32) {
    %c0_i32 = arith.constant 0 : i32
    %c0_i32_0 = arith.constant 0 : i32
    %c0_i32_1 = arith.constant 0 : i32
    return %c0_i32, %c0_i32_0 : i32, i32
  }
  func.func @transform_6(%arg0: i32) -> (i32, i32) {
    %c0_i32 = arith.constant 0 : i32
    %c0_i32_0 = arith.constant 0 : i32
    %c0_i32_1 = arith.constant 0 : i32
    return %c0_i32, %c0_i32_0 : i32, i32
  }
  func.func @transform_7(%arg0: i32) -> (i32, i32) {
    %c0_i32 = arith.constant 0 : i32
    %c0_i32_0 = arith.constant 0 : i32
    %c0_i32_1 = arith.constant 0 : i32
    return %c0_i32, %c0_i32_0 : i32, i32
  }
  func.func @transform_8(%arg0: i32) -> (i32, i32) {
    %c0_i32 = arith.constant 0 : i32
    %c0_i32_0 = arith.constant 0 : i32
    %c0_i32_1 = arith.constant 0 : i32
    return %c0_i32, %c0_i32_0 : i32, i32
  }
  func.func @transform_9(%arg0: i32) -> (i32, i32) {
    %c0_i32 = arith.constant 0 : i32
    %c0_i32_0 = arith.constant 0 : i32
    %c0_i32_1 = arith.constant 0 : i32
    return %c0_i32, %c0_i32_0 : i32, i32
  }
  func.func @transform_10(%arg0: i32) -> (i32, i32) {
    %c0_i32 = arith.constant 0 : i32
    %c0_i32_0 = arith.constant 0 : i32
    %c0_i32_1 = arith.constant 0 : i32
    return %c0_i32, %c0_i32_0 : i32, i32
  }
  func.func @transform_11(%arg0: i32) -> (i32, i32) {
    %c0_i32 = arith.constant 0 : i32
    %c0_i32_0 = arith.constant 0 : i32
    %c0_i32_1 = arith.constant 0 : i32
    return %c0_i32, %c0_i32_0 : i32, i32
  }
  func.func @transform_12(%arg0: i32) -> (i32, i32, i32) {
    %c0_i32 = arith.constant 0 : i32
    %c0_i32_0 = arith.constant 0 : i32
    %c0_i32_1 = arith.constant 0 : i32
    %c0_i32_2 = arith.constant 0 : i32
    return %c0_i32, %c0_i32_0, %c0_i32_1 : i32, i32, i32
  }
  func.func @transform_13(%arg0: i32) -> (i32, i32, i32) {
    %c0_i32 = arith.constant 0 : i32
    %c0_i32_0 = arith.constant 0 : i32
    %c0_i32_1 = arith.constant 0 : i32
    return %arg0, %c0_i32, %c0_i32_0 : i32, i32, i32
  }
}

</mosaic_0001>

<bundles_post_ra>
// kernel: tpu_custom_call.1
= control target key start
LH: loop header
LB: loop body
LE: loop exit
PB: predicated region body
PF: predicated region fallthrough
CT: control target
= control target key end

     0   :  { %s4294_s0 = inlined_call_operand.vmem [shape: f32[4,16,256], index: 0, kind: input, shape index: {}]   ;;  %s4295_s1 = inlined_call_operand.hbm [shape: f32[4,1,256], index: 1, kind: input, shape index: {}]   ;;  %s4296_s2 = inlined_call_operand.vmem [shape: f32[16,1], index: 2, kind: input, shape index: {}]   ;;  %s4297_s3 = inlined_call_operand.vmem [shape: f32[16,1], index: 3, kind: input, shape index: {}]   ;;  %s4298_s4 = inlined_call_operand.vmem [shape: f32[32,64], index: 4, kind: input, shape index: {}]   ;;  %s4299_s5 = inlined_call_operand.vmem [shape: f32[32,1], index: 5, kind: input, shape index: {}]   ;;  %s4300_s6 = inlined_call_operand.vmem [shape: bf16[32,32], index: 6, kind: input, shape index: {}]   ;;  %s4301_s7 = inlined_call_operand.vmem [shape: f32[32,1], index: 7, kind: input, shape index: {}]   ;;  %s4302_s8 = inlined_call_operand.vmem [shape: bf16[16,144], index: 8, kind: input, shape index: {}]   ;;  %s4303_s9 = inlined_call_operand.vmem [shape: f32[16,1], index: 9, kind: input, shape index: {}]   ;;  %s4304_s10 = inlined_call_operand.vmem [shape: bf16[16,16], index: 10, kind: input, shape index: {}]   ;;  %s4305_s11 = inlined_call_operand.vmem [shape: f32[16,1], index: 11, kind: input, shape index: {}]   ;;  %s4306_s12 = inlined_call_operand.vmem [shape: bf16[9,1,512], index: 12, kind: input, shape index: {}]   ;;  %s4307_s13 = inlined_call_operand.hbm [shape: f32[4,16,256], index: 13, kind: output, shape index: {}]  }
   0x1   :  { %4318 = sst [smem:[#allocation36_spill]] %s4294_s0 }
   0x2   :  { %18 = vsyncpa [#allocation6], 0 }
   0x3   :  { %20 = vsyncpa [#allocation6 + $0x1], 0 }
   0x4   :  { %21 = vsyncpa [#allocation7], 0 }
   0x5   :  { %23 = vsyncpa [#allocation7 + $0x1], 0  ;;  %s3261_s25 = smov 0   ;;  %s3263_s26 = smov 0  }
   0x6   :  { %s3265_s27 = smov 0   ;;  %s3267_s28 = smov 0  }
   0x7 LB: > { %4319 = sst [smem:[#allocation11_spill]] %s3161_s25  ;;  %s3282_s29 = sadd.s32 4294967295, %s3173_s28   ;;  %s3173_s28 = sphi %s3267_s28, %s4413_s28   ;;  %s3169_s27 = sphi %s3265_s27, %s4415_s27   ;;  %s3165_s26 = sphi %s3263_s26, %s4417_s26   ;;  %s3161_s25 = sphi %s3261_s25, %s4416_s25  }
   0x8   : > { %4320 = sst [smem:[#allocation12_spill]] %s3169_s27  ;;  %s2484_s30 = sadd.s32 4294967294, %s3173_s28  }
   0x9   : > { %s3286_s14 = sadd.s32 1, %s3173_s28   ;;  %s62_s15 = sadd.s32 1, %s3169_s27 }
   0xa   : > { %4321 = sst [smem:[#allocation13_spill]] %s3286_s14  ;;  %s59_s16 = ssub.s32 %s3173_s28, %s3286_s14 }
   0xb   : > { %p69_p0 = scmp.ne.s32.totalorder %s3169_s27, %s3165_s26  ;;  %p60_p1 = scmp.eq.s32.totalorder %s59_s16, 0 }
   0xc   : > { %p70_p2 = scmp.eq.s32.totalorder %s3173_s28, 0  ;;  %p75_p3 = scmp.ne.s32.totalorder %s3165_s26, %s3161_s25 }
   0xd   : > { %p76_p4 = scmp.eq.s32.totalorder %s3282_s29, 0  ;;  %p330_p7 = scmp.eq.s32.totalorder %s3282_s29, 1 }
   0xe   : > { %s3298_s17 = scalar_select %p60_p1, %s3169_s27, %s62_s15  }
   0xf   : > { %p3300_p5 = por %p70_p2, %p69_p0  ;;  %p3304_p6 = por %p76_p4, %p75_p3 }
  0x10   : > { %4322 = sst [smem:[#allocation14_spill]] %s3298_s17  ;;  %p336_p8 = scmp.eq.s32.totalorder %s2484_s30, 1 }
  0x11   : > { %p2659_p10 = scmp.lt.s32.totalorder %s3173_s28, 2  ;;  %p3311_p11 = por %p330_p7, %p69_p0 }
  0x12   : > { %p3315_p12 = por %p336_p8, %p75_p3  ;;  %s399_s22 = sand.u32 1, %s3169_s27  }
  0x13   : > { %s4325_s20 = scalar_select %p3311_p11, 1, 0 }
  0x14   : > { %s4326_s21 = scalar_select %p3315_p12, 1, 0 }
  0x15   : > { %s2593_s23 = sshll.u32 %s3173_s28, 6  ;;  %s2487_s24 = sshll.u32 %s399_s22, 2 }
  0x16   : > { %s3324_s17 = scalar_lea.hbm %s4295_s1, %s2593_s23  ;;  %s403_s30 = scalar_lea.vmem [#allocation5], %s2487_s24 }
  0x17   : > { %s411_s14 = sshll.u32 %s403_s30, 4  ;;  %p3328_p13 = pnand %p2659_p10, %p3300_p5  ;;  %s3332_s14 = int_to_ptr.vmem [resolvable:$true] %s411_s14 }
  0x18   : > { %s3334_s27 = scalar_lea.sflag [#allocation6], %s399_s22  ;;  %s3077_s15 = scalar_lea.hbm %s3324_s17, 64 }
  0x19   : > { %p3078_p0 = scmp.ne.s32.totalorder %s3324_s17, %s3077_s15  ;;  %p3079_p1 = pneg %p3328_p13 }
  0x1a   : > { %s3082_s24 = scalar_lea.hbm %s4295_s1, 128  ;;  %p3083_p4 = scmp.lt.u32.totalorder %s3324_s17, %s4295_s1 }
  0x1b   : > { %p3080_p2 = pnand %p3079_p1, %p3078_p0  ;;  %p3084_p5 = scmp.lt.u32.totalorder %s3082_s24, %s3077_s15 }
  0x1c   : > { %p3086_p8 = scmp.lt.u32.totalorder %s3077_s15, %s3324_s17 }
  0x1d   : > { %p3081_p3 = pneg %p3080_p2  ;;  %p3085_p7 = por %p3084_p5, %p3083_p4 }
  0x1f   : > { %p3087_p10 = por %p3086_p8, %p3085_p7 }
  0x21   : > { %p3088_p9 = pnand %p3087_p10, %p3081_p3 }
  0x23   : > { %3091 = shalt.err (!%p3088_p9)
}
  0x24   : > { %s3092_s22 = scalar_lea.vmem %s3332_s14, 64  ;;  %s3175_s23 = smov [#allocation5]  }
  0x25   : > { %p3093_p0 = scmp.ne.s32.totalorder %s3332_s14, %s3092_s22  ;;  %s3097_s18 = sshll.u32 %s3175_s23, 4  ;;  %s3098_s18 = int_to_ptr.vmem [resolvable:$false] %s3097_s18 }
  0x26   : > { %s3099_s16 = scalar_lea.vmem %s3098_s18, 128  ;;  %p3100_p11 = scmp.lt.s32.totalorder %s3332_s14, %s3098_s18 }
  0x27   : > { %p3095_p2 = pnand %p3093_p0, %p3079_p1  ;;  %p3101_p4 = scmp.lt.s32.totalorder %s3099_s16, %s3092_s22 }
  0x29   : > { %p3096_p12 = pneg %p3095_p2  ;;  %p3102_p5 = por %p3101_p4, %p3100_p11 }
  0x2b   : > { %p3103_p7 = pnand %p3102_p5, %p3096_p12 }
  0x2d   : > { %3106 = shalt.err (!%p3103_p7)
}
  0x2e   : > { %s3176_s15 = smov 32   ;;  %s3177_s24 = smov 2  }
  0x2f   : > { %2654 = dma.hbm_to_vmem [thread:$0]  (!%p3328_p13), %s3324_s17, 64, %s3332_s14, %s3334_s27, %s3176_s15, %s3176_s15, %s3177_s24  }
  0x30   : > { %p2491_p9 = scmp.ge.s32.totalorder %s3173_s28, 1  ;;  %p419_p1 = scmp.lt.s32.totalorder %s3173_s28, 3 }
  0x32   : > { %p420_p3 = pnand %p2491_p9, %p419_p1 }
  0x34   : > { %423 = sbr.rel (%p420_p3) target bundleno = 1877 (0x755), region = 72 }
  0x3b   : > { %s3365_s30 = sand.u32 1, %s3165_s26  }
  0x3c   : > { %s2492_s22 = sshll.u32 %s3365_s30, 2  ;;  %s426_s23 = scalar_lea.sflag [#allocation6], %s3365_s30 }
  0x3d   : > { %s3369_s18 = scalar_lea.vmem [#allocation5], %s2492_s22 }
  0x3e   : > { %3152 = dma.done.wait (%p3304_p6), %s426_s23, 64  }
  0x3f   : > { %3154 = vsyncadd (%p3304_p6), %s426_s23, 4294967232  ;;  %v4314_v0 = vmov 0   ;;  %v490_v1 = vld [vmem:[%s4297_s3] sm:$0xff]  ;;  %v491_v3 = vld [vmem:[%s4297_s3 + $0x8] sm:$0xff]  ;;  %s2494_s22 = sshll.u32 %s3282_s29, 1  ;;  %s4328_s0 = sld [smem:[#allocation36_spill]]  ;;  %v508_v12 = vlaneseq }
  0x40   : > { %2708 = vset.pattern.permute.xlu1 %v4314_v0  ;;  %2707 = vset.pattern.permute.xlu0 %v4314_v0  ;;  %v488_v2 = vld [vmem:[%s4296_s2] sm:$0xff]  ;;  %v489_v4 = vld [vmem:[%s4296_s2 + $0x8] sm:$0xff]  ;;  %p479_p6 = scmp.lt.s32.totalorder %s2494_s22, 3  ;;  %vm752_vm0 = vcmask 523264   ;;  %vm715_vm1 = vcmask 7168   ;;  %vm1024_vm2 = vcmask 261120  }
  0x41   : > { %1063 = vmatprep.mubr.bf16.mxu1 %v4314_v0  ;;  %524 = vperm.xlu1 %2708, %v490_v1   ;;  %v3415_v13 = vshrl.u32 %v508_v12, 7  ;;  %v2505_v16 = vld [vmem:[%s3369_s18 + $0x2] sm:$0x3]  ;;  %v496_v30 = vld [vmem:[%s3369_s18] sm:$0x3]  ;;  %s3179_s18 = smov 1  }
  0x42   : > { %499 = vperm.xlu0 %2707, %v488_v2   ;;  %s4419_s22 = smov (!%p479_p6, %s2494_s22), 3  ;;  %s4313_s24 = smov 16   ;;  %vm2053_vm3 = vcmask 130048  }
  0x43   : > { %s2594_s23 = sshll.u32 %s4419_s22, 5  ;;  %v3418_v14 = vsub.s32 0, %v3415_v13  ;;  %v514_v15 = vsub.s32 1, %v3415_v13  ;;  %s3182_s22 = smov 17  }
  0x44   : > { %s3184_s25 = smov 127   ;;  %s3185_s27 = smov 113  }
  0x45   : > { %529 = vperm.xlu1 %2708, %v491_v3   ;;  %s3394_s14 = scalar_lea.vmem %s4328_s0, %s2594_s23  ;;  %v608_v17 = vrot.slane %v2505_v16, %v3418_v14  ;;  %v612_v18 = vrot.slane %v2505_v16, %v514_v15  ;;  %v511_v34 = vrot.slane %v496_v30, %v3418_v14  ;;  %v515_v37 = vrot.slane %v496_v30, %v514_v15  ;;  %s3183_s23 = smov 15  }
  0x46   : > { %504 = vperm.xlu0 %2707, %v489_v4   ;;  %v3397_v5 = vld [vmem:[%s3394_s14 + $0x20] sm:$0xff]  ;;  %v3400_v6 = vld [vmem:[%s3394_s14 + $0x28] sm:$0xff]  ;;  %v3405_v8 = vld [vmem:[%s3394_s14 + $0x30] sm:$0xff]  ;;  %s3187_s17 = smov 111   ;;  %s2596_s19 = sshll.u32 %s3282_s29, 10 }
  0x47   : > { %v655_v7 = vadd.f32 %v3400_v6, %v3397_v5  ;;  %v3408_v9 = vld [vmem:[%s3394_s14 + $0x38] sm:$0xff]  ;;  %v663_v11 = vmax.f32 %v3397_v5, %v3400_v6  ;;  %v3444_v58 = vld [vmem:[%s3394_s14] sm:$0xff]  ;;  %v3447_v59 = vld [vmem:[%s3394_s14 + $0x8] sm:$0xff]  ;;  %s4244_s29 = scalar_lea.hbm %s4307_s13, %s2596_s19  ;;  %s2385_s15 = scalar_lea.sflag [#allocation7], %s3365_s30 }
  0x48   : > { %v658_v10 = vadd.f32 %v3408_v9, %v3405_v8  ;;  %v568_v3 = vadd.f32 %v3447_v59, %v3444_v58  ;;  %v666_v15 = vmax.f32 %v3405_v8, %v3408_v9  ;;  %v3466_v16 = vld [vmem:[%s3394_s14 + $0x10] sm:$0xff]  ;;  %p4408_p12 = scmp.ne.s32.totalorder %s4325_s20, 0 }
  0x65   : > { %656 = vadd.xlane.f32.xlu0 %v655_v7 }
  0x69   : > { %659 = vadd.xlane.f32.xlu1 %v658_v10 }
  0x6d   : > { %664 = vmax.xlane.f32.xlu1 %v663_v11  ;;  %v577_v11 = vmax.f32 %v3444_v58, %v3447_v59 }
  0xc0   : > { %v3425_v20 = vpop.permute.xlu1 %524 }
  0xc1   : > { %v3423_v19 = vpop.permute.xlu0 %499 }
  0xc2   : > { %v615_v21 = vmul.f32 %v608_v17, %v3423_v19  ;;  %v616_v22 = vmul.f32 %v612_v18, %v3423_v19 }
  0xc4   : > { %v619_v23 = vadd.f32 %v615_v21, %v3425_v20  ;;  %v620_v24 = vadd.f32 %v616_v22, %v3425_v20  ;;  %v530_v31 = vpop.permute.xlu1 %529  ;;  %v518_v21 = vmul.f32 %v511_v34, %v3423_v19 }
  0xc5   : > { %v505_v25 = vpop.permute.xlu0 %504 }
  0xc6   : > { %v2506_v26 = vmul.f32 -1.442695, %v619_v23  ;;  %v2507_v27 = vmul.f32 -1.442695, %v620_v24  ;;  %v617_v28 = vmul.f32 %v608_v17, %v505_v25  ;;  %v618_v29 = vmul.f32 %v612_v18, %v505_v25  ;;  %v3469_v17 = vld [vmem:[%s3394_s14 + $0x18] sm:$0xff]  ;;  %s3186_s14 = smov 112  }
  0xc7   : > { %v520_v38 = vmul.f32 %v511_v34, %v505_v25  ;;  %v521_v39 = vmul.f32 %v515_v37, %v505_v25  ;;  %v571_v22 = vadd.f32 %v3469_v17, %v3466_v16 }
  0xc8   : > { %v621_v32 = vadd.f32 %v617_v28, %v530_v31  ;;  %v622_v33 = vadd.f32 %v618_v29, %v530_v31  ;;  %2901 = vpow2.f32 %v2506_v26  ;;  %v580_v29 = vmax.f32 %v3466_v16, %v3469_v17 }
  0xc9   : > { %2903 = vpow2.f32 %v2507_v27  ;;  %v3433_v40 = vadd.f32 %v530_v31, %v520_v38  ;;  %v3435_v41 = vadd.f32 %v530_v31, %v521_v39  ;;  %v532_v27 = vadd.f32 %v3425_v20, %v518_v21 }
  0xca   : > { %v2508_v35 = vmul.f32 -1.442695, %v621_v32  ;;  %v2509_v36 = vmul.f32 -1.442695, %v622_v33 }
  0xcb   : > { %v2499_v45 = vmul.f32 -1.442695, %v3433_v40  ;;  %v2500_v47 = vmul.f32 -1.442695, %v3435_v41 }
  0xcc   : > { %2905 = vpow2.f32 %v2508_v35 }
  0xcd   : > { %2907 = vpow2.f32 %v2509_v36 }
  0xd2   : > { %v2902_v42 = vpop.eup %2901 }
  0xd3   : > { %v2904_v43 = vpop.eup %2903  ;;  %v635_v44 = vadd.f32 1.0, %v2902_v42 }
  0xd4   : > { %v636_v46 = vadd.f32 1.0, %v2904_v43 }
  0xd5   : > { %2909 = vrcp.f32 %v635_v44 }
  0xd6   : > { %v2906_v48 = vpop.eup %2905  ;;  %2911 = vrcp.f32 %v636_v46 }
  0xd7   : > { %v2908_v49 = vpop.eup %2907  ;;  %2913 = vpow2.f32 %v2499_v45  ;;  %v637_v50 = vadd.f32 1.0, %v2906_v48 }
  0xd8   : > { %2915 = vpow2.f32 %v2500_v47  ;;  %v638_v51 = vadd.f32 1.0, %v2908_v49 }
  0xd9   : > { %2917 = vrcp.f32 %v637_v50 }
  0xda   : > { %2919 = vrcp.f32 %v638_v51 }
  0xdf   : > { %v2910_v52 = vpop.eup %2909 }
  0xe0   : > { %v2912_v53 = vpop.eup %2911  ;;  %v3439_v54 = vmul.f32 %v2910_v52, %v619_v23  ;;  %v519_v23 = vmul.f32 %v515_v37, %v3423_v19  ;;  %v2497_v19 = vmul.f32 -1.442695, %v532_v27 }
  0xe1   : > { %v2914_v55 = vpop.eup %2913  ;;  %v3441_v56 = vmul.f32 %v2912_v53, %v620_v24 }
  0xe2   : > { %v2916_v57 = vpop.eup %2915  ;;  %v550_v2 = vadd.f32 1.0, %v2914_v55  ;;  %v533_v30 = vadd.f32 %v3425_v20, %v519_v23  ;;  %v729_v23 = vld [vmem:[%s4299_s5 + $0x8] sm:$0xff] }
  0xe3   : > { %v2918_v60 = vpop.eup %2917  ;;  %v677_v61 = vmax.f32 %v3439_v54, %v3441_v56  ;;  %v669_v62 = vadd.f32 %v3441_v56, %v3439_v54  ;;  %v551_v7 = vadd.f32 1.0, %v2916_v57 }
  0xe4   : > { %v2920_v63 = vpop.eup %2919  ;;  %v3453_v1 = vmul.f32 %v2918_v60, %v621_v32  ;;  %2921 = vrcp.f32 %v550_v2  ;;  %v2498_v35 = vmul.f32 -1.442695, %v533_v30  ;;  %v724_v2 = vld [vmem:[%s4298_s4] sm:$0xff] }
  0xe5   : > { %678 = vmax.xlane.f32.xlu1 %v677_v61  ;;  %670 = vadd.xlane.f32.xlu0 %v669_v62  ;;  %v3457_v4 = vmul.f32 %v2920_v63, %v622_v33  ;;  %2923 = vrcp.f32 %v551_v7  ;;  %v728_v63 = vld [vmem:[%s4299_s5] sm:$0xff] }
  0xe6   : > { %2925 = vpow2.f32 %v2497_v19  ;;  %2625 = vmatprep.mubr.msk.f32.mxu0 %vm752_vm0, %v724_v2 }
  0xe7   : > { %v672_v10 = vadd.f32 %v3457_v4, %v3453_v1  ;;  %v680_v18 = vmax.f32 %v3453_v1, %v3457_v4  ;;  %2927 = vpow2.f32 %v2498_v35 }
  0xe9   : > { %569 = vadd.xlane.f32.xlu1 %v568_v3  ;;  %673 = vadd.xlane.f32.xlu0 %v672_v10 }
  0xed   : > { %578 = vmax.xlane.f32.xlu1 %v577_v11  ;;  %667 = vmax.xlane.f32.xlu0 %v666_v15 }
  0xee   : > { %v2922_v24 = vpop.eup %2921 }
  0xef   : > { %v2924_v26 = vpop.eup %2923  ;;  %v3482_v33 = vmul.f32 %v2922_v24, %v3433_v40 }
  0xf0   : > { %v3485_v34 = vmul.f32 %v2924_v26, %v3435_v41  ;;  %v2926_v38 = vpop.eup %2925 }
  0xf1   : > { %681 = vmax.xlane.f32.xlu0 %v680_v18  ;;  %v2928_v39 = vpop.eup %2927  ;;  %v548_v40 = vadd.f32 1.0, %v2926_v38  ;;  %v730_v18 = vld [vmem:[%s4299_s5 + $0x10] sm:$0xff] }
  0xf2   : > { %v657_v25 = vpop.xlane.xlu0 %656  ;;  %v586_v37 = vadd.f32 %v3485_v34, %v3482_v33  ;;  %v594_v20 = vmax.f32 %v3482_v33, %v3485_v34  ;;  %v549_v41 = vadd.f32 1.0, %v2928_v39 }
  0xf3   : > { %v661_v32 = vmul.f32 0.00390625, %v657_v25  ;;  %2929 = vrcp.f32 %v548_v40 }
  0xf4   : > { %2931 = vrcp.f32 %v549_v41 }
  0xf5   : > { %572 = vadd.xlane.f32.xlu0 %v571_v22 }
  0xf6   : > { %v660_v28 = vpop.xlane.xlu1 %659 }
  0xf7   : > { %v662_v31 = vmul.f32 0.00390625, %v660_v28 }
  0xf9   : > { %581 = vmax.xlane.f32.xlu0 %v580_v29  ;;  %v2709_v36 = vpack.i.bf16 %v662_v31, %v661_v32 }
  0xfa   : > { %v665_v48 = vpop.xlane.xlu1 %664 }
  0xfd   : > { %587 = vadd.xlane.f32.xlu0 %v586_v37  ;;  %v2930_v42 = vpop.eup %2929 }
  0xfe   : > { %2710 = vrot.lane.b32.xlu1 %v2709_v36, %s3179_s18  ;;  %v2932_v43 = vpop.eup %2931  ;;  %v3492_v44 = vmul.f32 %v2930_v42, %v532_v27  ;;  %v731_v27 = vld [vmem:[%s4299_s5 + $0x18] sm:$0xff] }
  0xff   : > { %v3494_v45 = vmul.f32 %v2932_v43, %v533_v30 }
 0x101   : > { %595 = vmax.xlane.f32.xlu0 %v594_v20  ;;  %v583_v46 = vadd.f32 %v3494_v45, %v3492_v44  ;;  %v591_v47 = vmax.f32 %v3492_v44, %v3494_v45 }
 0x122   : > { %584 = vadd.xlane.f32.xlu1 %v583_v46 }
 0x126   : > { %592 = vmax.xlane.f32.xlu1 %v591_v47 }
 0x172   : > { %v679_v49 = vpop.xlane.xlu1 %678  ;;  %v671_v50 = vpop.xlane.xlu0 %670 }
 0x173   : > { %v675_v53 = vmul.f32 0.00390625, %v671_v50 }
 0x176   : > { %v674_v51 = vpop.xlane.xlu0 %673  ;;  %v570_v52 = vpop.xlane.xlu1 %569 }
 0x177   : > { %v676_v55 = vmul.f32 0.00390625, %v674_v51  ;;  %v575_v11 = vmul.f32 0.00390625, %v570_v52 }
 0x179   : > { %v2714_v57 = vpack.i.bf16 %v676_v55, %v675_v53 }
 0x17a   : > { %v668_v60 = vpop.xlane.xlu0 %667  ;;  %v579_v61 = vpop.xlane.xlu1 %578 }
 0x17b   : > { %v2719_v62 = vpack.i.bf16 %v668_v60, %v665_v48  ;;  %2715 = vrot.lane.b32.xlu0 %v2714_v57, %s3179_s18  ;;  %v725_v60 = vld [vmem:[%s4298_s4 + $0x8] sm:$0xff] }
 0x17d   : > { %2720 = vrot.lane.b32.xlu1 %v2719_v62, %s3179_s18  ;;  %v727_v62 = vld [vmem:[%s4298_s4 + $0x18] sm:$0xff] }
 0x17e   : > { %v682_v3 = vpop.xlane.xlu0 %681  ;;  %v2711_v7 = vpop.permute.xlu1 %2710 }
 0x17f   : > { %v2724_v10 = vpack.i.bf16 %v682_v3, %v679_v49  ;;  %734 = vperm.xlu0 %2707, %v728_v63   ;;  %v2712_v15 = vunpack.i.l.bf16 %v2711_v7  ;;  %v2713_v21 = vunpack.i.h.bf16 %v2711_v7 }
 0x181   : > { %2725 = vrot.lane.b32.xlu1 %v2724_v10, %s3179_s18  ;;  %v716_v25 = vsel %vm715_vm1, %v575_v11, %v2712_v15 }
 0x182   : > { %v573_v22 = vpop.xlane.xlu0 %572 }
 0x183   : > { %v576_v24 = vmul.f32 0.00390625, %v573_v22  ;;  %744 = vperm.xlu0 %2707, %v730_v18  }
 0x185   : > { %739 = vperm.xlu1 %2708, %v729_v23   ;;  %v717_v26 = vsel %vm715_vm1, %v576_v24, %v2713_v21 }
 0x186   : > { %v2631_v28 = vpack.c.bf16 %v717_v26, %v716_v25  ;;  %v582_v29 = vpop.xlane.xlu0 %581 }
 0x188   : > { %2632 = vmatprep.subr.bf16.mxu0 %v2631_v28 }
 0x189   : > { %749 = vperm.xlu1 %2708, %v731_v27   ;;  %2634 = vmatpush3.bf16.msra.mxu0 %v2631_v28 }
 0x18a   : > { %v588_v30 = vpop.xlane.xlu0 %587 }
 0x18b   : > { %v590_v36 = vmul.f32 0.00390625, %v588_v30 }
 0x18e   : > { %v596_v32 = vpop.xlane.xlu0 %595 }
 0x1af   : > { %v585_v31 = vpop.xlane.xlu1 %584 }
 0x1b0   : > { %v589_v37 = vmul.f32 0.00390625, %v585_v31 }
 0x1b3   : > { %v593_v19 = vpop.xlane.xlu1 %592 }
 0x1ed   : > { %v2716_v35 = vpop.permute.xlu0 %2715 }
 0x1ee   : > { %v2718_v20 = vunpack.i.h.bf16 %v2716_v35  ;;  %v2717_v38 = vunpack.i.l.bf16 %v2716_v35 }
 0x1ef   : > { %v2721_v39 = vpop.permute.xlu1 %2720 }
 0x1f0   : > { %v2723_v40 = vunpack.i.h.bf16 %v2721_v39  ;;  %v2722_v41 = vunpack.i.l.bf16 %v2721_v39  ;;  %v718_v42 = vsel %vm715_vm1, %v589_v37, %v2717_v38  ;;  %v719_v43 = vsel %vm715_vm1, %v590_v36, %v2718_v20 }
 0x1f1   : > { %v2635_v46 = vpack.c.bf16 %v719_v43, %v718_v42  ;;  %v3180_v43 = vmov 1  }
 0x1f2   : > { %v720_v47 = vsel %vm715_vm1, %v579_v61, %v2722_v41  ;;  %v721_v48 = vsel %vm715_vm1, %v582_v29, %v2723_v40  ;;  %v726_v61 = vld [vmem:[%s4298_s4 + $0x10] sm:$0xff] }
 0x1f3   : > { %v2726_v49 = vpop.permute.xlu1 %2725  ;;  %2636 = vmatprep.subr.bf16.mxu0 %v2635_v46  ;;  %v2639_v50 = vpack.c.bf16 %v721_v48, %v720_v47  ;;  %v992_v48 = vld [vmem:[%s4301_s7 + $0x10] sm:$0xff] }
 0x1f4   : > { %v2728_v51 = vunpack.i.h.bf16 %v2726_v49  ;;  %v2727_v52 = vunpack.i.l.bf16 %v2726_v49  ;;  %2638 = vmatpush3.bf16.msra.mxu0 %v2635_v46  ;;  %v993_v49 = vld [vmem:[%s4301_s7 + $0x18] sm:$0xff] }
 0x1f5   : > { %2640 = vmatprep.subr.bf16.mxu0 %v2639_v50 }
 0x1f6   : > { %v722_v53 = vsel %vm715_vm1, %v593_v19, %v2727_v52  ;;  %v723_v55 = vsel %vm715_vm1, %v596_v32, %v2728_v51 }
 0x1f7   : > { %v2643_v57 = vpack.c.bf16 %v723_v55, %v722_v53 }
 0x1f8   : > { %2642 = vmatpush3.bf16.msra.mxu0 %v2639_v50 }
 0x1f9   : > { %2644 = vmatprep.subr.bf16.mxu0 %v2643_v57 }
 0x1fc   : > { %2646 = vmatpush3.bf16.msra.mxu0 %v2643_v57 }
 0x1fe   : > { %v735_v2 = vpop.permute.xlu0 %734 }
 0x1ff   : > { %2626 = vmatmul.mubr.msk.f32.vlgmr.msra.gmra.mrb[0].mxu0 %vm752_vm0, %v725_v60 }
 0x200   : > { %2628 = vmatprep.mubr.msk.f32.mxu0 %vm752_vm0, %v726_v61 }
 0x202   : > { %v745_v23 = vpop.permute.xlu0 %744 }
 0x203   : > { %2629 = vmatmul.mubr.msk.f32.gmra.mrb[2].mxu0 %vm752_vm0, %v727_v62 }
 0x204   : > { %1116 = vmatprep.mubr.bf16.mxu0 %v4314_v0  ;;  %v740_v63 = vpop.permute.xlu1 %739 }
 0x208   : > { %v750_v18 = vpop.permute.xlu1 %749 }
 0x2d2   : > { %v2627_v3 = vpop.f32.mrb[0].mxu0 }
 0x2d3   : > { %v837_v7 = vadd.f32 %v2627_v3, %v740_v63  ;;  %v831_v10 = vpop.f32.mrb[1].mxu0 }
 0x2d4   : > { %v832_v11 = vadd.f32 %v831_v10, %v735_v2 }
 0x2d5   : > { %v851_v15 = vmax.f32 %v837_v7, 0.0 }
 0x2d6   : > { %v850_v21 = vmax.f32 %v832_v11, 0.0  ;;  %v2630_v22 = vpop.f32.mrb[2].mxu0 }
 0x2d7   : > { %v2515_v24 = vmul.f32 -1.442695, %v851_v15  ;;  %v847_v25 = vadd.f32 %v2630_v22, %v750_v18  ;;  %v841_v26 = vpop.f32.mrb[3].mxu0 }
 0x2d8   : > { %v2514_v27 = vmul.f32 -1.442695, %v850_v21  ;;  %v842_v28 = vadd.f32 %v841_v26, %v745_v23 }
 0x2d9   : > { %2933 = vpow2.f32 %v2515_v24  ;;  %v853_v29 = vmax.f32 %v847_v25, 0.0 }
 0x2da   : > { %2935 = vpow2.f32 %v2514_v27  ;;  %v852_v30 = vmax.f32 %v842_v28, 0.0 }
 0x2db   : > { %v2517_v31 = vmul.f32 -1.442695, %v853_v29 }
 0x2dc   : > { %v2516_v32 = vmul.f32 -1.442695, %v852_v30 }
 0x2de   : > { %2937 = vpow2.f32 %v2516_v32 }
 0x2df   : > { %2939 = vpow2.f32 %v2517_v31 }
 0x2e3   : > { %v2934_v19 = vpop.eup %2933 }
 0x2e4   : > { %v2936_v35 = vpop.eup %2935  ;;  %v867_v36 = vadd.f32 1.0, %v2934_v19 }
 0x2e5   : > { %v866_v37 = vadd.f32 1.0, %v2936_v35 }
 0x2e6   : > { %2941 = vrcp.f32 %v867_v36 }
 0x2e7   : > { %2943 = vrcp.f32 %v866_v37 }
 0x2e8   : > { %v2938_v20 = vpop.eup %2937 }
 0x2e9   : > { %v2940_v38 = vpop.eup %2939  ;;  %v868_v39 = vadd.f32 1.0, %v2938_v20 }
 0x2ea   : > { %v869_v40 = vadd.f32 1.0, %v2940_v38 }
 0x2eb   : > { %2945 = vrcp.f32 %v868_v39 }
 0x2ec   : > { %2947 = vrcp.f32 %v869_v40 }
 0x2f0   : > { %v2942_v41 = vpop.eup %2941 }
 0x2f1   : > { %v2944_v42 = vpop.eup %2943  ;;  %893 = vperm.xlu1 %2708, %v2942_v41  }
 0x2f2   : > { %888 = vperm.xlu0 %2707, %v2944_v42  }
 0x2f5   : > { %2729 = vset.pattern.permute.xlu1 %v3180_v43  ;;  %v2946_v46 = vpop.eup %2945 }
 0x2f6   : > { %943 = vperm.xlu1 %2729, %v2942_v41   ;;  %2730 = vset.pattern.permute.xlu0 %v3180_v43  ;;  %v2948_v47 = vpop.eup %2947 }
 0x2f7   : > { %939 = vperm.xlu0 %2730, %v2944_v42  }
 0x2fa   : > { %2732 = vset.pattern.permute.xlu1 %v4314_v0 }
 0x2fb   : > { %910 = vperm.xlu1 %2732, %v2946_v46   ;;  %2731 = vset.pattern.permute.xlu0 %v4314_v0 }
 0x2fc   : > { %915 = vperm.xlu0 %2731, %v2948_v47  }
 0x2ff   : > { %2733 = vset.pattern.permute.xlu1 %v3180_v43 }
 0x300   : > { %959 = vperm.xlu1 %2733, %v2946_v46   ;;  %1006 = vperm.xlu0 %2731, %v992_v48  }
 0x304   : > { %963 = vperm.xlu1 %2733, %v2948_v47  }
 0x308   : > { %2734 = vset.pattern.permute.xlu1 %v4314_v0 }
 0x309   : > { %1011 = vperm.xlu1 %2734, %v993_v49  }
 0x370   : > { %v894_v50 = vpop.permute.xlu1 %893 }
 0x371   : > { %v898_v51 = vmul.f32 %v894_v50, %v3482_v33  ;;  %v899_v52 = vmul.f32 %v894_v50, %v3485_v34  ;;  %v889_v53 = vpop.permute.xlu0 %888 }
 0x372   : > { %v896_v55 = vmul.f32 %v889_v53, %v3492_v44  ;;  %v897_v57 = vmul.f32 %v889_v53, %v3494_v45 }
 0x373   : > { %v903_v60 = vadd.f32 %v899_v52, %v3469_v17  ;;  %v902_v61 = vadd.f32 %v898_v51, %v3466_v16 }
 0x374   : > { %v901_v62 = vadd.f32 %v897_v57, %v3447_v59  ;;  %v900_v63 = vadd.f32 %v896_v55, %v3444_v58 }
 0x375   : > { %v944_v2 = vpop.permute.xlu1 %943 }
 0x376   : > { %v948_v3 = vmul.f32 %v944_v2, %v3453_v1  ;;  %v949_v7 = vmul.f32 %v944_v2, %v3457_v4  ;;  %v940_v10 = vpop.permute.xlu0 %939  ;;  %v905_v11 = vpack.c.bf16 %v903_v60, %v901_v62  ;;  %v904_v15 = vpack.c.bf16 %v902_v61, %v900_v63 }
 0x377   : > { %v946_v18 = vmul.f32 %v940_v10, %v3439_v54  ;;  %v947_v21 = vmul.f32 %v940_v10, %v3441_v56 }
 0x378   : > { %v952_v22 = vadd.f32 %v3405_v8, %v948_v3  ;;  %v953_v23 = vadd.f32 %v3408_v9, %v949_v7  ;;  %1031 = vmatprep.subr.bf16.mxu1 %v905_v11 }
 0x379   : > { %v950_v24 = vadd.f32 %v3397_v5, %v946_v18  ;;  %v951_v25 = vadd.f32 %v3400_v6, %v947_v21  ;;  %1032 = vmatpush1.bf16.msra.mxu1 %v904_v15 }
 0x37a   : > { %v911_v26 = vpop.permute.xlu1 %910 }
 0x37b   : > { %v954_v27 = vpack.c.bf16 %v952_v22, %v950_v24  ;;  %v918_v28 = vmul.f32 %v911_v26, %v3444_v58  ;;  %v919_v29 = vmul.f32 %v911_v26, %v3447_v59  ;;  %v916_v30 = vpop.permute.xlu0 %915  ;;  %v955_v31 = vpack.c.bf16 %v953_v23, %v951_v25 }
 0x37c   : > { %v920_v32 = vmul.f32 %v916_v30, %v3466_v16  ;;  %v921_v19 = vmul.f32 %v916_v30, %v3469_v17  ;;  %v2895_v16 = vld [vmem:[%s4300_s6] sm:$0xff]  }
 0x37d   : > { %v922_v35 = vadd.f32 %v918_v28, %v3492_v44  ;;  %v923_v36 = vadd.f32 %v919_v29, %v3494_v45  ;;  %1084 = vmatprep.subr.bf16.mxu0 %v955_v31 }
 0x37e   : > { %v924_v37 = vadd.f32 %v920_v32, %v3482_v33  ;;  %v925_v20 = vadd.f32 %v921_v19, %v3485_v34  ;;  %1085 = vmatpush1.bf16.msra.mxu0 %v954_v27 }
 0x37f   : > { %v960_v38 = vpop.permute.xlu1 %959 }
 0x380   : > { %v927_v58 = vpack.c.bf16 %v925_v20, %v923_v36  ;;  %v926_v39 = vpack.c.bf16 %v924_v37, %v922_v35  ;;  %v966_v59 = vmul.f32 %v3397_v5, %v960_v38  ;;  %v967_v40 = vmul.f32 %v3400_v6, %v960_v38 }
 0x382   : > { %1033 = vmatprep.subr.bf16.mxu1 %v927_v58  ;;  %v970_v44 = vadd.f32 %v966_v59, %v3439_v54  ;;  %v971_v45 = vadd.f32 %v967_v40, %v3441_v56 }
 0x383   : > { %v964_v17 = vpop.permute.xlu1 %963  ;;  %1034 = vmatpush1.bf16.msra.mxu1 %v926_v39 }
 0x384   : > { %v968_v33 = vmul.f32 %v3405_v8, %v964_v17  ;;  %v969_v34 = vmul.f32 %v3408_v9, %v964_v17  ;;  %v2896_v8 = vld [vmem:[%s4300_s6 + $0x8] sm:$0xff]  }
 0x386   : > { %v972_v5 = vadd.f32 %v968_v33, %v3453_v1  ;;  %v973_v6 = vadd.f32 %v969_v34, %v3457_v4  ;;  %2524 = vmatmul.mubr.msk.bf16.vlgmr.msra.gmra.mrb[0].mxu1 %vm1024_vm2, %v2895_v16  ;;  %v1007_v4 = vpop.permute.xlu0 %1006 }
 0x387   : > { %1073 = vmatprep.mubr.bf16.mxu1 %v4314_v0 }
 0x388   : > { %v974_v41 = vpack.c.bf16 %v972_v5, %v970_v44  ;;  %v975_v42 = vpack.c.bf16 %v973_v6, %v971_v45  ;;  %v1012_v43 = vpop.permute.xlu1 %1011 }
 0x38a   : > { %1086 = vmatprep.subr.bf16.mxu0 %v975_v42 }
 0x38b   : > { %1087 = vmatpush1.bf16.msra.mxu0 %v974_v41 }
 0x38e   : > { %2525 = vmatmul.mubr.msk.bf16.gmra.mrb[4].mxu1 %vm1024_vm2, %v2896_v8  ;;  %2526 = vmatmul.mubr.msk.bf16.vlgmr.msra.gmra.mrb[4].mxu0 %vm1024_vm2, %v2895_v16 }
 0x38f   : > { %1126 = vmatprep.mubr.bf16.mxu0 %v4314_v0 }
 0x396   : > { %2527 = vmatmul.mubr.msk.bf16.gmra.mrb[8].mxu0 %vm1024_vm2, %v2896_v8 }
 0x459   : > { %v3593_v9 = vpop.f32.mrb[0].mxu1 }
 0x45a   : > { %4329 = vst [vmem:[#allocation15_spill] sm:$0xff] %v3593_v9  ;;  %v3595_v54 = vpop.f32.mrb[1].mxu1 }
 0x45b   : > { %4330 = vst [vmem:[#allocation16_spill] sm:$0xff] %v3595_v54  ;;  %v3597_v56 = vpop.f32.mrb[2].mxu1 }
 0x45c   : > { %4331 = vst [vmem:[#allocation17_spill] sm:$0xff] %v3597_v56  ;;  %v3599_v1 = vpop.f32.mrb[3].mxu1 }
 0x45d   : > { %4332 = vst [vmem:[#allocation18_spill] sm:$0xff] %v3599_v1 }
 0x461   : > { %v1075_v46 = vpop.f32.mrb[4].mxu1  ;;  %v3601_v47 = vpop.f32.mrb[4].mxu0 }
 0x462   : > { %4333 = vst [vmem:[#allocation19_spill] sm:$0xff] %v3601_v47  ;;  %v1076_v48 = vadd.f32 %v1075_v46, %v1007_v4  ;;  %v1077_v49 = vpop.f32.mrb[5].mxu1  ;;  %v3603_v50 = vpop.f32.mrb[5].mxu0 }
 0x463   : > { %4334 = vst [vmem:[#allocation20_spill] sm:$0xff] %v3603_v50  ;;  %v1078_v51 = vadd.f32 %v1077_v49, %v1007_v4  ;;  %v1079_v52 = vpop.f32.mrb[6].mxu1  ;;  %v3605_v53 = vpop.f32.mrb[6].mxu0 }
 0x464   : > { %4335 = vst [vmem:[#allocation21_spill] sm:$0xff] %v3605_v53  ;;  %v2536_v55 = vmul.f32 -1.442695, %v1076_v48  ;;  %v1080_v57 = vadd.f32 %v1079_v52, %v1012_v43  ;;  %v1081_v60 = vpop.f32.mrb[7].mxu1  ;;  %v3607_v61 = vpop.f32.mrb[7].mxu0 }
 0x465   : > { %4336 = vst [vmem:[#allocation22_spill] sm:$0xff] %v3607_v61  ;;  %v2537_v62 = vmul.f32 -1.442695, %v1078_v51  ;;  %v1082_v63 = vadd.f32 %v1081_v60, %v1012_v43 }
 0x466   : > { %2949 = vpow2.f32 %v2536_v55  ;;  %v2540_v2 = vmul.f32 -1.442695, %v1080_v57 }
 0x467   : > { %2951 = vpow2.f32 %v2537_v62  ;;  %v2541_v3 = vmul.f32 -1.442695, %v1082_v63 }
 0x468   : > { %2953 = vpow2.f32 %v2540_v2 }
 0x469   : > { %2955 = vpow2.f32 %v2541_v3  ;;  %v1128_v7 = vpop.f32.mrb[8].mxu0 }
 0x46a   : > { %v1129_v10 = vadd.f32 %v1128_v7, %v1007_v4  ;;  %v1130_v11 = vpop.f32.mrb[9].mxu0  ;;  %v2033_v7 = vld [vmem:[%s4303_s9 + $0x8] sm:$0xff] }
 0x46b   : > { %v1131_v15 = vadd.f32 %v1130_v11, %v1007_v4  ;;  %v1132_v18 = vpop.f32.mrb[10].mxu0  ;;  %v991_v11 = vld [vmem:[%s4301_s7 + $0x8] sm:$0xff] }
 0x46c   : > { %v2538_v21 = vmul.f32 -1.442695, %v1129_v10  ;;  %v1133_v22 = vadd.f32 %v1132_v18, %v1012_v43  ;;  %v1134_v23 = vpop.f32.mrb[11].mxu0  ;;  %v2206_v18 = vld [vmem:[%s4305_s11 + $0x8] sm:$0xff] }
 0x46d   : > { %v2539_v24 = vmul.f32 -1.442695, %v1131_v15  ;;  %v1135_v25 = vadd.f32 %v1134_v23, %v1012_v43  ;;  %v3188_v23 = vmov 1966171168  }
 0x46e   : > { %2957 = vpow2.f32 %v2538_v21  ;;  %v2542_v26 = vmul.f32 -1.442695, %v1133_v22  ;;  %v990_v21 = vld [vmem:[%s4301_s7] sm:$0xff] }
 0x46f   : > { %2959 = vpow2.f32 %v2539_v24  ;;  %v2543_v27 = vmul.f32 -1.442695, %v1135_v25  ;;  %v1291_v24 = vunpack.c.l.s4 %v3188_v23 }
 0x470   : > { %v2950_v28 = vpop.eup %2949  ;;  %2961 = vpow2.f32 %v2542_v26 }
 0x471   : > { %v2952_v29 = vpop.eup %2951  ;;  %v1217_v30 = vadd.f32 1.0, %v2950_v28  ;;  %2963 = vpow2.f32 %v2543_v27  ;;  %v2546_v27 = vld.sshfl [vmem:[%s4306_s12 + $0x4] sm:$0x33 pattern:$0x75316420] }
 0x472   : > { %v2954_v31 = vpop.eup %2953  ;;  %v1218_v32 = vadd.f32 1.0, %v2952_v29  ;;  %v2544_v28 = vld.sshfl [vmem:[%s4306_s12] sm:$0x33 pattern:$0x75316420]  ;;  %v1381_v29 = vcombine.high %v2546_v27, %v2546_v27 }
 0x473   : > { %v2956_v19 = vpop.eup %2955  ;;  %2965 = vrcp.f32 %v1217_v30  ;;  %v1221_v35 = vadd.f32 1.0, %v2954_v31  ;;  %v2548_v30 = vld.sshfl [vmem:[%s4306_s12 + $0x8] sm:$0x33 pattern:$0x75316420]  ;;  %v1289_v31 = vcombine.high %v2544_v28, %v2544_v28 }
 0x474   : > { %2967 = vrcp.f32 %v1218_v32  ;;  %v1222_v36 = vadd.f32 1.0, %v2956_v19  ;;  %v1473_v19 = vcombine.high %v2548_v30, %v2548_v30 }
 0x475   : > { %2969 = vrcp.f32 %v1221_v35 }
 0x476   : > { %2971 = vrcp.f32 %v1222_v36 }
 0x478   : > { %v2958_v37 = vpop.eup %2957 }
 0x479   : > { %v2960_v20 = vpop.eup %2959  ;;  %v1219_v38 = vadd.f32 1.0, %v2958_v37 }
 0x47a   : > { %v2962_v58 = vpop.eup %2961  ;;  %v1220_v39 = vadd.f32 1.0, %v2960_v20 }
 0x47b   : > { %v2964_v59 = vpop.eup %2963  ;;  %2973 = vrcp.f32 %v1219_v38  ;;  %v1223_v40 = vadd.f32 1.0, %v2962_v58 }
 0x47c   : > { %2975 = vrcp.f32 %v1220_v39  ;;  %v1224_v16 = vadd.f32 1.0, %v2964_v59 }
 0x47d   : > { %v2966_v17 = vpop.eup %2965  ;;  %2977 = vrcp.f32 %v1223_v40 }
 0x47e   : > { %v2968_v33 = vpop.eup %2967  ;;  %2979 = vrcp.f32 %v1224_v16  ;;  %v3609_v45 = vmul.f32 %v2966_v17, %v1076_v48 }
 0x47f   : > { %v2970_v34 = vpop.eup %2969  ;;  %v3613_v6 = vmul.f32 %v2968_v33, %v1078_v51 }
 0x480   : > { %v2972_v44 = vpop.eup %2971  ;;  %4337 = vst [vmem:[#allocation23_spill] sm:$0xff] %v3609_v45  ;;  %v3611_v5 = vmul.f32 %v2970_v34, %v1080_v57 }
 0x481   : > { %v3615_v41 = vmul.f32 %v2972_v44, %v1082_v63 }
 0x482   : > { %4338 = vst [vmem:[#allocation24_spill] sm:$0xff] %v3611_v5  ;;  %v2740_v42 = vpack.i.bf16 %v3611_v5, %v3609_v45 }
 0x483   : > { %v2790_v8 = vpack.i.bf16 %v3615_v41, %v3613_v6 }
 0x484   : > { %2741 = vrot.lane.b32.xlu1 %v2740_v42, %s4313_s24  ;;  %2736 = vrot.lane.b32.xlu0 %v2740_v42, %s3182_s22 }
 0x485   : > { %v2974_v4 = vpop.eup %2973 }
 0x486   : > { %v2976_v43 = vpop.eup %2975  ;;  %v3627_v52 = vmul.f32 %v2974_v4, %v1129_v10  ;;  %v2899_v10 = vld [vmem:[%s4302_s8 + $0x4] ss:$8 sps:$4 sm:$0xff]   ;;  %v3699_v4 = vand.u32 127, %v508_v12 }
 0x487   : > { %v2978_v49 = vpop.eup %2977  ;;  %v3631_v57 = vmul.f32 %v2976_v43, %v1131_v15  ;;  %v2032_v15 = vld [vmem:[%s4303_s9] sm:$0xff]  ;;  %2561 = vmatprep.mubr.msk.bf16.mxu1 %vm2053_vm3, %v2899_v10  ;;  %2562 = vmatprep.mubr.msk.bf16.mxu0 %vm2053_vm3, %v2899_v10  ;;  %v2552_v12 = vld.sshfl [vmem:[%s4306_s12 + $0x14] sm:$0x33 pattern:$0x75316420] }
 0x488   : > { %v2980_v51 = vpop.eup %2979  ;;  %v3629_v55 = vmul.f32 %v2978_v49, %v1133_v22  ;;  %2751 = vrot.lane.b32.xlu1 %v2740_v42, %s3183_s23  ;;  %v2205_v22 = vld [vmem:[%s4305_s11] sm:$0xff]  ;;  %vm1267_vm4 = vcmp.lt.s32.totalorder %v3699_v4, 17  ;;  %vm1358_vm5 = vcmp.lt.s32.totalorder %v3699_v4, 16  ;;  %vm1450_vm6 = vcmp.lt.s32.totalorder %v3699_v4, 15 }
 0x489   : > { %v3633_v60 = vmul.f32 %v2980_v51, %v1135_v25  ;;  %v1292_v25 = vunpack.c.0.s8 %v1291_v24  ;;  %v2554_v51 = vld.sshfl [vmem:[%s4306_s12 + $0x18] sm:$0x33 pattern:$0x75316420]  ;;  %vm1542_vm7 = vcmp.lt.s32.totalorder %v3699_v4, 1  ;;  %vm1734_vm8 = vcmp.lt.s32.totalorder %v3699_v4, 113 }
 0x48a   : > { %v2745_v62 = vpack.i.bf16 %v3629_v55, %v3627_v52  ;;  %vm1826_vm9 = vcmp.lt.s32.totalorder %v3699_v4, 112  ;;  %vm1642_vm10 = vcmp.lt.s32.totalorder %v3699_v4, 127  ;;  %vm1918_vm11 = vcmp.lt.s32.totalorder %v3699_v4, 111 }
 0x48b   : > { %v2810_v63 = vpack.i.bf16 %v3633_v60, %v3631_v57  ;;  %v3677_v26 = vsub.s32 %v1292_v25, %v3415_v13  ;;  %v2550_v13 = vld.sshfl [vmem:[%s4306_s12 + $0xc] sm:$0x33 pattern:$0x75316420] }
 0x48c   : > { %2761 = vrot.lane.b32.xlu1 %v2740_v42, %s3179_s18  ;;  %2746 = vrot.lane.b32.xlu0 %v2745_v62, %s3182_s22  ;;  %v1565_v20 = vcombine.high %v2550_v13, %v2550_v13 }
 0x48d   : > { %v1296_v32 = vrot.slane %v2544_v28, %v3677_v26  ;;  %v1395_v35 = vrot.slane %v1381_v29, %v3677_v26  ;;  %v1303_v36 = vrot.slane %v1289_v31, %v3677_v26  ;;  %v1487_v58 = vrot.slane %v1473_v19, %v3677_v26 }
 0x48e   : > { %v1388_v16 = vrot.slane %v2546_v27, %v3677_v26  ;;  %v1579_v33 = vrot.slane %v1565_v20, %v3677_v26  ;;  %v1757_v19 = vcombine.high %v2554_v51, %v2554_v51 }
 0x48f   : > { %v1304_v37 = vcombine.high %v1296_v32, %v1296_v32  ;;  %v1305_v38 = vcombine.high %v1303_v36, %v1303_v36  ;;  %v1397_v39 = vcombine.high %v1395_v35, %v1395_v35  ;;  %v1314_v59 = vpack.i.b16 %v1303_v36, %v1303_v36 }
 0x490   : > { %2771 = vrot.lane.b32.xlu1 %v2745_v62, %s3179_s18  ;;  %2756 = vrot.lane.b32.xlu0 %v2745_v62, %s4313_s24  ;;  %v1307_v17 = vpack.i.b16 %v1296_v32, %v1296_v32  ;;  %v1396_v44 = vcombine.high %v1388_v16, %v1388_v16  ;;  %v1399_v10 = vpack.i.b16 %v1388_v16, %v1388_v16 }
 0x491   : > { %v1321_v40 = vpack.i.b16 %v1304_v37, %v1304_v37  ;;  %v1328_v34 = vpack.i.b16 %v1305_v38, %v1305_v38  ;;  %v1420_v49 = vpack.i.b16 %v1397_v39, %v1397_v39  ;;  %v1498_v31 = vpack.i.b16 %v1487_v58, %v1487_v58 }
 0x492   : > { %v1413_v24 = vpack.i.b16 %v1396_v44, %v1396_v44  ;;  %v3739_v36 = vrot.slane %v1399_v10, %v3418_v14  ;;  %v1665_v37 = vcombine.high %v2552_v12, %v2552_v12 }
 0x493   : > { %v3723_v23 = vrot.slane %v1328_v34, %v3418_v14 }
 0x494   : > { %2776 = vrot.lane.b32.xlu1 %v2745_v62, %s3184_s25  ;;  %2766 = vrot.lane.b32.xlu0 %v2745_v62, %s3183_s23  ;;  %v1679_v10 = vrot.slane %v1665_v37, %v3677_v26 }
 0x498   : > { %2791 = vrot.lane.b32.xlu1 %v2790_v8, %s3182_s22  ;;  %2781 = vrot.lane.b32.xlu0 %v2740_v42, %s3184_s25 }
 0x49c   : > { %2796 = vrot.lane.b32.xlu1 %v2740_v42, %s3185_s27  ;;  %2786 = vrot.lane.b32.xlu0 %v2745_v62, %s3185_s27 }
 0x4a0   : > { %2811 = vrot.lane.b32.xlu1 %v2810_v63, %s4313_s24  ;;  %2801 = vrot.lane.b32.xlu0 %v2810_v63, %s3182_s22 }
 0x4a4   : > { %2821 = vrot.lane.b32.xlu1 %v2810_v63, %s3183_s23  ;;  %2806 = vrot.lane.b32.xlu0 %v2790_v8, %s4313_s24 }
 0x4a8   : > { %2836 = vrot.lane.b32.xlu1 %v2810_v63, %s3179_s18  ;;  %2816 = vrot.lane.b32.xlu0 %v2790_v8, %s3183_s23 }
 0x4ac   : > { %2841 = vrot.lane.b32.xlu1 %v2740_v42, %s3186_s14  ;;  %2826 = vrot.lane.b32.xlu0 %v2790_v8, %s3179_s18  ;;  %s3189_s18 = smov [#allocation8]  }
 0x4ad   : > { %s3111_s23 = sshll.u32 %s3189_s18, 4  ;;  %s3112_s23 = int_to_ptr.vmem [resolvable:$false] %s3111_s23 }
 0x4b0   : > { %2856 = vrot.lane.b32.xlu1 %v2790_v8, %s3185_s27  ;;  %2831 = vrot.lane.b32.xlu0 %v2745_v62, %s3186_s14 }
 0x4b4   : > { %2866 = vrot.lane.b32.xlu1 %v2790_v8, %s3186_s14  ;;  %2846 = vrot.lane.b32.xlu0 %v2790_v8, %s3184_s25 }
 0x4b8   : > { %2876 = vrot.lane.b32.xlu1 %v2790_v8, %s3187_s17  ;;  %2851 = vrot.lane.b32.xlu0 %v2745_v62, %s3187_s17  ;;  %v1480_v8 = vrot.slane %v2548_v30, %v3677_v26  ;;  %v3707_v62 = vrot.slane %v1314_v59, %v3418_v14  ;;  %v3730_v30 = vrot.slane %v1420_v49, %v3418_v14 }
 0x4b9   : > { %v1590_v59 = vpack.i.b16 %v1579_v33, %v1579_v33 }
 0x4ba   : > { %v1491_v27 = vpack.i.b16 %v1480_v8, %v1480_v8 }
 0x4bc   : > { %2881 = vrot.lane.b32.xlu1 %v2740_v42, %s3187_s17  ;;  %2861 = vrot.lane.b32.xlu0 %v2810_v63, %s3184_s25  ;;  %v1489_v42 = vcombine.high %v1487_v58, %v1487_v58  ;;  %v3742_v58 = vrot.slane %v1413_v24, %v3418_v14  ;;  %s3113_s25 = scalar_lea.vmem %s3112_s23, 2048 }
 0x4be   : > { %v1512_v25 = vpack.i.b16 %v1489_v42, %v1489_v42 }
 0x4c0   : > { %2891 = vrot.lane.b32.xlu1 %v2810_v63, %s3187_s17  ;;  %2871 = vrot.lane.b32.xlu0 %v2810_v63, %s3185_s27  ;;  %v3745_v16 = vrot.slane %v1512_v25, %v3418_v14  ;;  %s2493_s17 = sshll.u32 %s3365_s30, 6 }
 0x4c4   : > { %2041 = vperm.xlu1 %2734, %v2033_v7   ;;  %2886 = vrot.lane.b32.xlu0 %v2810_v63, %s3186_s14  ;;  %v3710_v63 = vrot.slane %v1321_v40, %v3418_v14  ;;  %v1406_v7 = vpack.i.b16 %v1395_v35, %v1395_v35  ;;  %s4224_s14 = scalar_lea.vmem [#allocation8], %s2493_s17 }
 0x4c5   : > { %s2399_s16 = sshll.u32 %s4224_s14, 4  ;;  %s4247_s16 = int_to_ptr.vmem [resolvable:$true] %s2399_s16 }
 0x4c6   : > { %v3736_v35 = vrot.slane %v1406_v7, %v3418_v14  ;;  %v1764_v7 = vrot.slane %v2554_v51, %v3677_v26  ;;  %v1681_v51 = vcombine.high %v1679_v10, %v1679_v10  ;;  %s3107_s22 = scalar_lea.vmem %s4247_s16, 1024  ;;  %p3114_p10 = scmp.lt.s32.totalorder %s4247_s16, %s3112_s23 }
 0x4c7   : > { %p3108_p11 = scmp.ne.s32.totalorder %s4247_s16, %s3107_s22  ;;  %p3115_p0 = scmp.lt.s32.totalorder %s3113_s25, %s3107_s22 }
 0x4c8   : > { %1001 = vperm.xlu1 %2734, %v991_v11   ;;  %2036 = vperm.xlu0 %2731, %v2032_v15   ;;  %v3716_v11 = vrot.slane %v1307_v17, %v3418_v14  ;;  %v1488_v15 = vcombine.high %v1480_v8, %v1480_v8  ;;  %v3748_v17 = vrot.slane %v1491_v27, %v3418_v14 }
 0x4c9   : > { %v3755_v8 = vrot.slane %v1498_v31, %v3418_v14  ;;  %v3770_v27 = vrot.slane %v1590_v59, %v3418_v14  ;;  %v1772_v46 = vcombine.high %v1764_v7, %v1764_v7  ;;  %p3109_p13 = pnand %p3108_p11, %p4408_p12  ;;  %p3116_p2 = por %p3115_p0, %p3114_p10 }
 0x4ca   : > { %v1505_v38 = vpack.i.b16 %v1488_v15, %v1488_v15  ;;  %v1672_v15 = vrot.slane %v2552_v12, %v3677_v26 }
 0x4cb   : > { %p3110_p8 = pneg %p3109_p13 }
 0x4cc   : > { %2214 = vperm.xlu1 %2734, %v2206_v18   ;;  %996 = vperm.xlu0 %2731, %v990_v21   ;;  %v1581_v18 = vcombine.high %v1579_v33, %v1579_v33  ;;  %v1572_v21 = vrot.slane %v2550_v13, %v3677_v26  ;;  %v2558_v13 = vld.sshfl [vmem:[%s4306_s12 + $0x20] sm:$0x33 pattern:$0x75316420]  ;;  %v1771_v33 = vrot.slane %v1757_v19, %v3677_v26 }
 0x4cd   : > { %v1941_v34 = vcombine.high %v2558_v13, %v2558_v13  ;;  %v3764_v24 = vrot.slane %v1505_v38, %v3418_v14  ;;  %v1948_v19 = vrot.slane %v2558_v13, %v3677_v26  ;;  %v1683_v0 = vpack.i.b16 %v1672_v15, %v1672_v15  ;;  %p3117_p4 = pnand %p3116_p2, %p3110_p8 }
 0x4ce   : > { %v1580_v32 = vcombine.high %v1572_v21, %v1572_v21  ;;  %v1604_v39 = vpack.i.b16 %v1581_v18, %v1581_v18  ;;  %v1583_v40 = vpack.i.b16 %v1572_v21, %v1572_v21  ;;  %v1782_v38 = vpack.i.b16 %v1771_v33, %v1771_v33 }
 0x4cf   : > { %v1955_v12 = vrot.slane %v1941_v34, %v3677_v26  ;;  %v1773_v59 = vcombine.high %v1771_v33, %v1771_v33  ;;  %v1704_v13 = vpack.i.b16 %v1681_v51, %v1681_v51  ;;  %v1959_v61 = vpack.i.b16 %v1948_v19, %v1948_v19 }
 0x4d0   : > { %2209 = vperm.xlu0 %2731, %v2205_v22   ;;  %v2556_v22 = vld.sshfl [vmem:[%s4306_s12 + $0x1c] sm:$0x33 pattern:$0x75316420]  ;;  %v1597_v49 = vpack.i.b16 %v1580_v32, %v1580_v32  ;;  %v3767_v25 = vrot.slane %v1604_v39, %v3418_v14  ;;  %v3773_v31 = vrot.slane %v1583_v40, %v3418_v14  ;;  %v1680_v32 = vcombine.high %v1672_v15, %v1672_v15 }
 0x4d1   : > { %v1849_v20 = vcombine.high %v2556_v22, %v2556_v22  ;;  %v1856_v21 = vrot.slane %v2556_v22, %v3677_v26  ;;  %v1775_v39 = vpack.i.b16 %v1764_v7, %v1764_v7  ;;  %v1690_v40 = vpack.i.b16 %v1679_v10, %v1679_v10 }
 0x4d2   : > { %v1957_v2 = vcombine.high %v1955_v12, %v1955_v12  ;;  %v1697_v50 = vpack.i.b16 %v1680_v32, %v1680_v32  ;;  %v1966_v47 = vpack.i.b16 %v1955_v12, %v1955_v12  ;;  %v1796_v10 = vpack.i.b16 %v1773_v59, %v1773_v59 }
 0x4d3   : > { %v1863_v18 = vrot.slane %v1849_v20, %v3677_v26  ;;  %v3783_v20 = vrot.slane %v1597_v49, %v3418_v14  ;;  %v1867_v3 = vpack.i.b16 %v1856_v21, %v1856_v21  ;;  %v1956_v26 = vcombine.high %v1948_v19, %v1948_v19 }
 0x4d4   : > { %v3790_v49 = vrot.slane %v1782_v38, %v3418_v14  ;;  %v3793_v33 = vrot.slane %v1775_v39, %v3418_v14  ;;  %v1864_v15 = vcombine.high %v1856_v21, %v1856_v21  ;;  %v3796_v7 = vrot.slane %v1690_v40, %v3418_v14 }
 0x4d5   : > { %v1874_v48 = vpack.i.b16 %v1863_v18, %v1863_v18  ;;  %v1865_v34 = vcombine.high %v1863_v18, %v1863_v18  ;;  %v3799_v18 = vrot.slane %v1683_v0, %v3418_v14  ;;  %v3805_v32 = vrot.slane %v1867_v3, %v3418_v14 }
 0x4d6   : > { %v1789_v12 = vpack.i.b16 %v1772_v46, %v1772_v46  ;;  %v1980_v38 = vpack.i.b16 %v1957_v2, %v1957_v2  ;;  %v1973_v9 = vpack.i.b16 %v1956_v26, %v1956_v26  ;;  %v3808_v39 = vrot.slane %v1704_v13, %v3418_v14 }
 0x4d7   : > { %v3802_v51 = vrot.slane %v1874_v48, %v3418_v14  ;;  %4339 = vst [vmem:[#allocation25_spill] sm:$0xff] %v3805_v32  ;;  %v1888_v19 = vpack.i.b16 %v1865_v34, %v1865_v34  ;;  %v3811_v21 = vrot.slane %v1697_v50, %v3418_v14  ;;  %v3814_v59 = vrot.slane %v1966_v47, %v3418_v14 }
 0x4d8   : > { %4340 = vst [vmem:[#allocation26_spill] sm:$0xff] %v3808_v39  ;;  %v3817_v0 = vrot.slane %v1959_v61, %v3418_v14  ;;  %v3825_v2 = vrot.slane %v1796_v10, %v3418_v14  ;;  %v1881_v50 = vpack.i.b16 %v1864_v15, %v1864_v15  ;;  %v3830_v13 = vrot.slane %v1789_v12, %v3418_v14 }
 0x4d9   : > { %4341 = vst [vmem:[#allocation27_spill] sm:$0xff] %v3811_v21  ;;  %4342 = vst [vmem:[#allocation28_spill] sm:$0xff] %v3814_v59  ;;  %v3833_v48 = vrot.slane %v1888_v19, %v3418_v14  ;;  %v3836_v1 = vrot.slane %v1980_v38, %v3418_v14  ;;  %v3839_v56 = vrot.slane %v1973_v9, %v3418_v14 }
 0x4da   : > { %4343 = vst [vmem:[#allocation29_spill] sm:$0xff] %v3817_v0  ;;  %4344 = vst [vmem:[#allocation30_spill] sm:$0xff] %v3825_v2 }
 0x4db   : > { %4345 = vst [vmem:[#allocation31_spill] sm:$0xff] %v3830_v13  ;;  %4346 = vst [vmem:[#allocation32_spill] sm:$0xff] %v3833_v48 }
 0x4dc   : > { %4347 = vst [vmem:[#allocation33_spill] sm:$0xff] %v3836_v1  ;;  %4348 = vst [vmem:[#allocation34_spill] sm:$0xff] %v3839_v56  ;;  %v3858_v56 = vrot.slane %v1881_v50, %v3418_v14 }
 0x4de   : > { %4350 = vst [vmem:[#allocation35_spill] sm:$0xff] %v3858_v56 }
 0x4e3   : > { %v4398_v4 = vld [vmem:[#allocation33_spill] sm:$0xff] }
 0x4f6   : > { %v3701_v43 = vpop.permute.xlu1 %2741  ;;  %v3725_v28 = vpop.permute.xlu0 %2736 }
 0x4f7   : > { %v2738_v3 = vunpack.i.l.bf16 %v3725_v28  ;;  %v4349_v12 = vunpack.i.h.bf16 %v3725_v28 }
 0x4fa   : > { %v3727_v29 = vpop.permute.xlu1 %2751 }
 0x4fb   : > { %v4353_v5 = vunpack.i.l.bf16 %v3727_v29 }
 0x4fe   : > { %v3750_v44 = vpop.permute.xlu1 %2761  ;;  %v3752_v42 = vpop.permute.xlu0 %2746 }
 0x4ff   : > { %v2749_v34 = vunpack.i.h.bf16 %v3752_v42  ;;  %v2748_v47 = vunpack.i.l.bf16 %v3752_v42 }
 0x502   : > { %v3777_v37 = vpop.permute.xlu1 %2771  ;;  %v3779_v22 = vpop.permute.xlu0 %2756 }
 0x503   : > { %v2759_v50 = vunpack.i.h.bf16 %v3779_v22 }
 0x506   : > { %v3785_v53 = vpop.permute.xlu1 %2776  ;;  %v3787_v54 = vpop.permute.xlu0 %2766 }
 0x50a   : > { %v2792_v46 = vpop.permute.xlu1 %2791  ;;  %v3821_v40 = vpop.permute.xlu0 %2781 }
 0x50b   : > { %v2794_v26 = vunpack.i.h.bf16 %v2792_v46  ;;  %v2793_v61 = vunpack.i.l.bf16 %v2792_v46 }
 0x50d   : > { %v1270_v10 = vsel %vm1267_vm4, %v2793_v61, %v2748_v47  ;;  %v1271_v42 = vsel %vm1267_vm4, %v2794_v26, %v2749_v34  ;;  %v1272_v15 = vsel %vm1267_vm4, %v2738_v3, %v2793_v61  ;;  %v1273_v19 = vsel %vm1267_vm4, %v4349_v12, %v2794_v26 }
 0x50e   : > { %v1278_v46 = vpack.c.bf16 %v1271_v42, %v1270_v10  ;;  %v3852_v1 = vpop.permute.xlu1 %2796  ;;  %v3854_v9 = vpop.permute.xlu0 %2786  ;;  %v1277_v48 = vpack.c.bf16 %v1273_v19, %v1272_v15  ;;  %v2743_v61 = vunpack.i.l.bf16 %v3701_v43  ;;  %v2758_v19 = vunpack.i.l.bf16 %v3779_v22 }
 0x50f   : > { %v2769_v26 = vunpack.i.h.bf16 %v3787_v54  ;;  %v2768_v10 = vunpack.i.l.bf16 %v3787_v54 }
 0x510   : > { %v1335_v12 = vmul.bf16 %v3707_v62, %v1277_v48  ;;  %v3868_v15 = vmul.bf16 %v3710_v63, %v1278_v46 }
 0x512   : > { %v2812_v62 = vpop.permute.xlu1 %2811  ;;  %v2802_v48 = vpop.permute.xlu0 %2801  ;;  %2057 = vmatprep.subr.bf16.mxu1 %v1335_v12 }
 0x513   : > { %v2814_v63 = vunpack.i.h.bf16 %v2812_v62  ;;  %v2813_v46 = vunpack.i.l.bf16 %v2812_v62  ;;  %v2804_v14 = vunpack.i.h.bf16 %v2802_v48  ;;  %v2803_v38 = vunpack.i.l.bf16 %v2802_v48 }
 0x514   : > { %v4351_v62 = vunpack.i.h.bf16 %v3701_v43 }
 0x515   : > { %v1359_v42 = vsel %vm1358_vm5, %v2758_v19, %v2813_v46  ;;  %v1365_v12 = vsel %vm1358_vm5, %v2813_v46, %v2743_v61  ;;  %v1360_v22 = vsel %vm1358_vm5, %v2759_v50, %v2814_v63  ;;  %v1268_v2 = vsel %vm1267_vm4, %v2748_v47, %v2803_v38 }
 0x516   : > { %v1366_v48 = vsel %vm1358_vm5, %v2814_v63, %v4351_v62  ;;  %v1269_v54 = vsel %vm1267_vm4, %v2749_v34, %v2804_v14  ;;  %v1274_v13 = vsel %vm1267_vm4, %v2803_v38, %v2738_v3  ;;  %v2822_v56 = vpop.permute.xlu1 %2821  ;;  %v2807_v59 = vpop.permute.xlu0 %2806  ;;  %v4352_v46 = vunpack.i.h.bf16 %v3725_v28 }
 0x517   : > { %v2824_v62 = vunpack.i.h.bf16 %v2822_v56  ;;  %v2823_v39 = vunpack.i.l.bf16 %v2822_v56  ;;  %v2809_v0 = vunpack.i.h.bf16 %v2807_v59  ;;  %v1367_v63 = vpack.c.bf16 %v1366_v48, %v1365_v12 }
 0x518   : > { %v1275_v21 = vsel %vm1267_vm4, %v2804_v14, %v4352_v46  ;;  %v2808_v45 = vunpack.i.l.bf16 %v2807_v59  ;;  %v1279_v47 = vpack.c.bf16 %v1269_v54, %v1268_v2  ;;  %v4354_v28 = vunpack.i.h.bf16 %v3727_v29 }
 0x519   : > { %v1276_v32 = vpack.c.bf16 %v1275_v21, %v1274_v13  ;;  %v1451_v34 = vsel %vm1450_vm6, %v2768_v10, %v2823_v39  ;;  %v3910_v3 = vsel %vm1450_vm6, %v2823_v39, %v4353_v5  ;;  %v1370_v56 = vpack.c.bf16 %v1360_v22, %v1359_v42 }
 0x51a   : > { %v3916_v38 = vsel %vm1450_vm6, %v2824_v62, %v4354_v28  ;;  %v1452_v21 = vsel %vm1450_vm6, %v2769_v26, %v2824_v62  ;;  %v1361_v2 = vsel %vm1358_vm5, %v2808_v45, %v2758_v19  ;;  %v1362_v5 = vsel %vm1358_vm5, %v2809_v0, %v2759_v50  ;;  %v2837_v39 = vpop.permute.xlu1 %2836  ;;  %v2817_v13 = vpop.permute.xlu0 %2816 }
 0x51b   : > { %v1459_v59 = vpack.c.bf16 %v3916_v38, %v3910_v3  ;;  %v4355_v14 = vunpack.i.h.bf16 %v3701_v43  ;;  %v1363_v22 = vsel %vm1358_vm5, %v2743_v61, %v2808_v45  ;;  %v2839_v54 = vunpack.i.h.bf16 %v2837_v39 }
 0x51c   : > { %v2838_v12 = vunpack.i.l.bf16 %v2837_v39  ;;  %v2819_v48 = vunpack.i.h.bf16 %v2817_v13  ;;  %v2818_v46 = vunpack.i.l.bf16 %v2817_v13  ;;  %v1334_v19 = vmul.bf16 %v3716_v11, %v1276_v32 }
 0x51d   : > { %v1364_v42 = vsel %vm1358_vm5, %v4355_v14, %v2809_v0  ;;  %v1337_v50 = vmul.bf16 %v3723_v23, %v1279_v47  ;;  %v1369_v62 = vpack.c.bf16 %v1362_v5, %v1361_v2  ;;  %v4356_v3 = vunpack.i.l.bf16 %v3777_v37 }
 0x51e   : > { %v4357_v28 = vunpack.i.l.bf16 %v3750_v44  ;;  %v4358_v45 = vunpack.i.h.bf16 %v3750_v44  ;;  %v4359_v11 = vunpack.i.h.bf16 %v3777_v37  ;;  %v4360_v32 = vunpack.i.h.bf16 %v3727_v29  ;;  %2058 = vmatpush1.bf16.msra.mxu1 %v1334_v19  ;;  %v3963_v5 = vpop.permute.xlu1 %2841  ;;  %v2827_v39 = vpop.permute.xlu0 %2826 }
 0x51f   : > { %v1543_v43 = vsel %vm1542_vm7, %v4356_v3, %v2838_v12  ;;  %v1453_v38 = vsel %vm1450_vm6, %v2818_v46, %v2768_v10  ;;  %v1454_v2 = vsel %vm1450_vm6, %v2819_v48, %v2769_v26  ;;  %v4361_v14 = vunpack.i.l.bf16 %v3727_v29  ;;  %2100 = vmatprep.subr.bf16.mxu0 %v1337_v50 }
 0x520   : > { %v3943_v0 = vsel %vm1542_vm7, %v2838_v12, %v4357_v28  ;;  %v3949_v61 = vsel %vm1542_vm7, %v2839_v54, %v4358_v45  ;;  %v1544_v23 = vsel %vm1542_vm7, %v4359_v11, %v2839_v54  ;;  %v1456_v47 = vsel %vm1450_vm6, %v4360_v32, %v2819_v48  ;;  %2101 = vmatpush1.bf16.msra.mxu0 %v3868_v15 }
 0x521   : > { %v1551_v13 = vpack.c.bf16 %v3949_v61, %v3943_v0  ;;  %v1455_v54 = vsel %vm1450_vm6, %v4361_v14, %v2818_v46  ;;  %v1461_v12 = vpack.c.bf16 %v1454_v2, %v1453_v38  ;;  %v1429_v10 = vmul.bf16 %v3730_v30, %v1370_v56 }
 0x522   : > { %v2844_v26 = vunpack.i.h.bf16 %v3963_v5  ;;  %v2829_v48 = vunpack.i.h.bf16 %v2827_v39  ;;  %v2828_v19 = vunpack.i.l.bf16 %v2827_v39  ;;  %v1368_v3 = vpack.c.bf16 %v1364_v42, %v1363_v22 }
 0x523   : > { %2102 = vmatprep.subr.bf16.mxu0 %v1429_v10  ;;  %v1426_v28 = vmul.bf16 %v3739_v36, %v1367_v63  ;;  %v1428_v29 = vmul.bf16 %v3742_v58, %v1369_v62  ;;  %v1462_v0 = vpack.c.bf16 %v1452_v21, %v1451_v34  ;;  %v1460_v46 = vpack.c.bf16 %v1456_v47, %v1455_v54  ;;  %v2857_v58 = vpop.permute.xlu1 %2856  ;;  %v3991_v63 = vpop.permute.xlu0 %2831 }
 0x524   : > { %v2843_v50 = vunpack.i.l.bf16 %v3963_v5  ;;  %v4362_v30 = vmov %v4359_v11  ;;  %v4363_v15 = vmov %v4358_v45  ;;  %v4364_v42 = vunpack.i.l.bf16 %v3777_v37  ;;  %v4397_v5 = vld [vmem:[#allocation32_spill] sm:$0xff] }
 0x525   : > { %v1546_v56 = vsel %vm1542_vm7, %v2829_v48, %v4362_v30  ;;  %v1548_v45 = vsel %vm1542_vm7, %v4363_v15, %v2829_v48  ;;  %v4365_v34 = vunpack.i.l.bf16 %v3750_v44  ;;  %v1427_v22 = vmul.bf16 %v3736_v35, %v1368_v3  ;;  %2103 = vmatpush1.bf16.msra.mxu0 %v1428_v29 }
 0x526   : > { %v1545_v36 = vsel %vm1542_vm7, %v2828_v19, %v4364_v42  ;;  %v1521_v62 = vmul.bf16 %v3745_v16, %v1462_v0  ;;  %v2859_v61 = vunpack.i.h.bf16 %v2857_v58  ;;  %v2858_v32 = vunpack.i.l.bf16 %v2857_v58 }
 0x527   : > { %v1547_v21 = vsel %vm1542_vm7, %v4365_v34, %v2828_v19  ;;  %v1553_v11 = vpack.c.bf16 %v1546_v56, %v1545_v36  ;;  %v2834_v37 = vunpack.i.h.bf16 %v3991_v63  ;;  %v1519_v47 = vmul.bf16 %v3755_v8, %v1460_v46  ;;  %2059 = vmatprep.subr.bf16.mxu1 %v1427_v22  ;;  %v2867_v3 = vpop.permute.xlu1 %2866  ;;  %v2847_v29 = vpop.permute.xlu0 %2846 }
 0x528   : > { %2104 = vmatprep.subr.bf16.mxu0 %v1521_v62  ;;  %v4366_v38 = vunpack.i.h.bf16 %v3854_v9  ;;  %v4367_v2 = vunpack.i.h.bf16 %v3852_v1  ;;  %v2833_v16 = vunpack.i.l.bf16 %v3991_v63  ;;  %v1518_v39 = vmul.bf16 %v3748_v17, %v1459_v59  ;;  %2060 = vmatpush1.bf16.msra.mxu1 %v1426_v28  ;;  %v4395_v63 = vld [vmem:[#allocation34_spill] sm:$0xff] }
 0x529   : > { %v4368_v14 = vunpack.i.l.bf16 %v3854_v9  ;;  %v4369_v54 = vunpack.i.l.bf16 %v3852_v1  ;;  %v1520_v48 = vmul.bf16 %v3764_v24, %v1461_v12  ;;  %v1554_v19 = vpack.c.bf16 %v1544_v23, %v1543_v43  ;;  %2061 = vmatprep.subr.bf16.mxu1 %v1519_v47 }
 0x52a   : > { %v1738_v44 = vsel %vm1734_vm8, %v2859_v61, %v4366_v38  ;;  %v1740_v35 = vsel %vm1734_vm8, %v4367_v2, %v2859_v61  ;;  %v2869_v46 = vunpack.i.h.bf16 %v2867_v3  ;;  %v2868_v17 = vunpack.i.l.bf16 %v2867_v3 }
 0x52b   : > { %v1737_v8 = vsel %vm1734_vm8, %v2858_v32, %v4368_v14  ;;  %v1739_v10 = vsel %vm1734_vm8, %v4369_v54, %v2858_v32  ;;  %v2849_v59 = vunpack.i.h.bf16 %v2847_v29  ;;  %2105 = vmatpush1.bf16.msra.mxu0 %v1520_v48  ;;  %v1613_v28 = vmul.bf16 %v3767_v25, %v1554_v19  ;;  %v2877_v36 = vpop.permute.xlu1 %2876  ;;  %v2852_v58 = vpop.permute.xlu0 %2851 }
 0x52c   : > { %v1743_v0 = vpack.c.bf16 %v1740_v35, %v1739_v10  ;;  %v2848_v30 = vunpack.i.l.bf16 %v2847_v29  ;;  %v1552_v56 = vpack.c.bf16 %v1548_v45, %v1547_v21  ;;  %v1610_v15 = vmul.bf16 %v3773_v31, %v1551_v13  ;;  %2062 = vmatpush1.bf16.msra.mxu1 %v1518_v39 }
 0x52d   : > { %v1829_v24 = vsel %vm1826_vm9, %v2868_v17, %v2833_v16  ;;  %v1830_v43 = vsel %vm1826_vm9, %v2869_v46, %v2834_v37  ;;  %v1831_v23 = vsel %vm1826_vm9, %v2843_v50, %v2868_v17  ;;  %v1832_v25 = vsel %vm1826_vm9, %v2844_v26, %v2869_v46  ;;  %2106 = vmatprep.subr.bf16.mxu0 %v1613_v28 }
 0x52e   : > { %v1835_v31 = vpack.c.bf16 %v1832_v25, %v1831_v23  ;;  %v4370_v13 = vunpack.i.h.bf16 %v3785_v53  ;;  %v4371_v45 = vunpack.i.l.bf16 %v3785_v53  ;;  %v4372_v34 = vunpack.i.l.bf16 %v3821_v40 }
 0x52f   : > { %v4373_v22 = vunpack.i.h.bf16 %v3821_v40  ;;  %v1611_v61 = vmul.bf16 %v3770_v27, %v1552_v56  ;;  %v1612_v32 = vmul.bf16 %v3783_v20, %v1553_v11  ;;  %v2879_v38 = vunpack.i.h.bf16 %v2877_v36  ;;  %v2882_v20 = vpop.permute.xlu1 %2881  ;;  %v2862_v11 = vpop.permute.xlu0 %2861 }
 0x530   : > { %v1646_v12 = vsel %vm1642_vm10, %v2849_v59, %v4370_v13  ;;  %v1645_v42 = vsel %vm1642_vm10, %v2848_v30, %v4371_v45  ;;  %v1647_v21 = vsel %vm1642_vm10, %v4372_v34, %v2848_v30  ;;  %v2878_v2 = vunpack.i.l.bf16 %v2877_v36  ;;  %v4380_v30 = vld [vmem:[#allocation23_spill] sm:$0xff] }
 0x531   : > { %v1648_v62 = vsel %vm1642_vm10, %v4373_v22, %v2849_v59  ;;  %v2854_v35 = vunpack.i.h.bf16 %v2852_v58  ;;  %2063 = vmatprep.subr.bf16.mxu1 %v1611_v61  ;;  %2107 = vmatpush1.bf16.msra.mxu0 %v1612_v32  ;;  %v2853_v39 = vunpack.i.l.bf16 %v2852_v58  ;;  %v1652_v14 = vpack.c.bf16 %v1646_v12, %v1645_v42 }
 0x532   : > { %v1651_v47 = vpack.c.bf16 %v1648_v62, %v1647_v21  ;;  %v1744_v54 = vpack.c.bf16 %v1738_v44, %v1737_v8  ;;  %v1802_v10 = vmul.bf16 %v3793_v33, %v1743_v0  ;;  %2064 = vmatpush1.bf16.msra.mxu1 %v1610_v15  ;;  %v4374_v48 = vpack.c.bf16 %v3633_v60, %v3631_v57 }
 0x533   : > { %v1922_v27 = vsel %vm1918_vm11, %v2879_v38, %v2854_v35  ;;  %v1836_v3 = vpack.c.bf16 %v1830_v43, %v1829_v24  ;;  %v4375_v29 = vpack.c.bf16 %v3615_v41, %v3613_v6  ;;  %v1921_v33 = vsel %vm1918_vm11, %v2878_v2, %v2853_v39  ;;  %v2892_v23 = vpop.permute.xlu1 %2891  ;;  %v2872_v25 = vpop.permute.xlu0 %2871 }
 0x534   : > { %2108 = vmatprep.subr.bf16.mxu0 %v4374_v48  ;;  %v1710_v19 = vmul.bf16 %v3799_v18, %v1651_v47  ;;  %v2884_v44 = vunpack.i.h.bf16 %v2882_v20  ;;  %v2883_v8 = vunpack.i.l.bf16 %v2882_v20  ;;  %v2864_v0 = vunpack.i.h.bf16 %v2862_v11 }
 0x535   : > { %2065 = vmatprep.subr.bf16.mxu1 %v4375_v29  ;;  %v2863_v57 = vunpack.i.l.bf16 %v2862_v11  ;;  %v1711_v60 = vmul.bf16 %v3796_v7, %v1652_v14  ;;  %v1803_v46 = vmul.bf16 %v3790_v49, %v1744_v54  ;;  %v1895_v17 = vmul.bf16 %v3802_v51, %v1836_v3  ;;  %v4379_v51 = vld [vmem:[#allocation24_spill] sm:$0xff]  ;;  %v4390_v29 = vld [vmem:[#allocation26_spill] sm:$0xff] }
 0x536   : > { %v4376_v18 = vpack.c.bf16 %v3629_v55, %v3627_v52  ;;  %v1923_v6 = vsel %vm1918_vm11, %v2883_v8, %v2878_v2  ;;  %v1924_v41 = vsel %vm1918_vm11, %v2884_v44, %v2879_v38  ;;  %v4377_v59 = vmov %v4370_v13  ;;  %v4384_v13 = vld [vmem:[#allocation25_spill] sm:$0xff] }
 0x537   : > { %v1644_v28 = vsel %vm1642_vm10, %v4377_v59, %v2864_v0  ;;  %v4378_v7 = vmov %v4373_v22  ;;  %v4381_v52 = vpack.c.bf16 %v4379_v51, %v4380_v30  ;;  %v1927_v55 = vpack.c.bf16 %v1924_v41, %v1923_v6  ;;  %v4385_v22 = vld [vmem:[#allocation29_spill] sm:$0xff]  ;;  %v2887_v48 = vpop.permute.xlu0 %2886  ;;  %v4393_v41 = vld [vmem:[#allocation30_spill] sm:$0xff]  ;;  %v4394_v59 = vld [vmem:[#allocation31_spill] sm:$0xff] }
 0x538   : > { %2109 = vmatpush1.bf16.msra.mxu0 %v4376_v18  ;;  %v1650_v49 = vsel %vm1642_vm10, %v2864_v0, %v4378_v7  ;;  %v4382_v56 = vmov %v4371_v45  ;;  %v4383_v24 = vmov %v4372_v34  ;;  %v1894_v12 = vmul.bf16 %v4384_v13, %v1835_v31  ;;  %v4392_v0 = vld [vmem:[#allocation28_spill] sm:$0xff] }
 0x539   : > { %2066 = vmatpush1.bf16.msra.mxu1 %v4381_v52  ;;  %v1643_v15 = vsel %vm1642_vm10, %v4382_v56, %v2863_v57  ;;  %v1649_v43 = vsel %vm1642_vm10, %v2863_v57, %v4383_v24  ;;  %v2894_v42 = vunpack.i.h.bf16 %v2892_v23  ;;  %v2893_v36 = vunpack.i.l.bf16 %v2892_v23 }
 0x53a   : > { %v1653_v45 = vpack.c.bf16 %v1644_v28, %v1643_v15  ;;  %2067 = vmatprep.subr.bf16.mxu1 %v1711_v60  ;;  %v2874_v58 = vunpack.i.h.bf16 %v2872_v25  ;;  %v2873_v34 = vunpack.i.l.bf16 %v2872_v25  ;;  %v1654_v21 = vpack.c.bf16 %v1650_v49, %v1649_v43 }
 0x53b   : > { %v1928_v53 = vpack.c.bf16 %v1922_v27, %v1921_v33  ;;  %v1986_v62 = vmul.bf16 %v4385_v22, %v1927_v55  ;;  %v1919_v40 = vsel %vm1918_vm11, %v2853_v39, %v2893_v36  ;;  %v1920_v61 = vsel %vm1918_vm11, %v2854_v35, %v2894_v42 }
 0x53c   : > { %v1925_v32 = vsel %vm1918_vm11, %v2893_v36, %v2883_v8  ;;  %v1926_v31 = vsel %vm1918_vm11, %v2894_v42, %v2884_v44  ;;  %v1929_v47 = vpack.c.bf16 %v1920_v61, %v1919_v40  ;;  %v4386_v38 = vunpack.i.h.bf16 %v3852_v1  ;;  %v4391_v44 = vld [vmem:[#allocation27_spill] sm:$0xff] }
 0x53d   : > { %2068 = vmatpush1.bf16.msra.mxu1 %v1710_v19  ;;  %v4387_v14 = vunpack.i.l.bf16 %v3854_v9  ;;  %v4388_v35 = vunpack.i.h.bf16 %v3854_v9  ;;  %v4389_v27 = vunpack.i.l.bf16 %v3852_v1  ;;  %v2889_v19 = vunpack.i.h.bf16 %v2887_v48 }
 0x53e   : > { %v1742_v2 = vsel %vm1734_vm8, %v2874_v58, %v4386_v38  ;;  %2069 = vmatprep.subr.bf16.mxu1 %v1803_v46  ;;  %v2888_v3 = vunpack.i.l.bf16 %v2887_v48  ;;  %v1713_v33 = vmul.bf16 %v4390_v29, %v1654_v21  ;;  %v1712_v8 = vmul.bf16 %v4391_v44, %v1653_v45 }
 0x53f   : > { %v1735_v39 = vsel %vm1734_vm8, %v4387_v14, %v2873_v34  ;;  %v1736_v54 = vsel %vm1734_vm8, %v4388_v35, %v2874_v58  ;;  %v1741_v20 = vsel %vm1734_vm8, %v2873_v34, %v4389_v27  ;;  %v1987_v57 = vmul.bf16 %v4392_v0, %v1928_v53 }
 0x540   : > { %v1745_v11 = vpack.c.bf16 %v1736_v54, %v1735_v39  ;;  %v1746_v9 = vpack.c.bf16 %v1742_v2, %v1741_v20  ;;  %v1834_v60 = vsel %vm1826_vm9, %v2889_v19, %v2844_v26  ;;  %v1827_v1 = vsel %vm1826_vm9, %v2833_v16, %v2888_v3  ;;  %2110 = vmatprep.subr.bf16.mxu0 %v1713_v33 }
 0x541   : > { %v1828_v46 = vsel %vm1826_vm9, %v2834_v37, %v2889_v19  ;;  %v1833_v18 = vsel %vm1826_vm9, %v2888_v3, %v2843_v50  ;;  %2070 = vmatpush1.bf16.msra.mxu1 %v1802_v10  ;;  %2111 = vmatpush1.bf16.msra.mxu0 %v1712_v8  ;;  %v1930_v7 = vpack.c.bf16 %v1926_v31, %v1925_v32  ;;  %v4396_v37 = vld [vmem:[#allocation35_spill] sm:$0xff] }
 0x542   : > { %v1837_v6 = vpack.c.bf16 %v1828_v46, %v1827_v1  ;;  %v1805_v26 = vmul.bf16 %v4393_v41, %v1746_v9  ;;  %v1804_v28 = vmul.bf16 %v4394_v59, %v1745_v11  ;;  %2071 = vmatprep.subr.bf16.mxu1 %v1895_v17  ;;  %v1838_v16 = vpack.c.bf16 %v1834_v60, %v1833_v18  ;;  %v2897_v10 = vld [vmem:[%s4302_s8] ss:$8 sps:$4 sm:$0xff]  }
 0x543   : > { %v1988_v49 = vmul.bf16 %v4395_v63, %v1929_v47  ;;  %v1989_v50 = vmul.bf16 %v4398_v4, %v1930_v7  ;;  %v4399_v17 = vmov 0   ;;  %v2042_v24 = vpop.permute.xlu1 %2041 }
 0x544   : > { %2112 = vmatprep.subr.bf16.mxu0 %v1805_v26  ;;  %v1896_v51 = vmul.bf16 %v4396_v37, %v1837_v6  ;;  %v1897_v30 = vmul.bf16 %v4397_v5, %v1838_v16  ;;  %v2900_v5 = vld [vmem:[%s4304_s10] sm:$0xff]  }
 0x545   : > { %2072 = vmatpush1.bf16.msra.mxu1 %v1894_v12  ;;  %2113 = vmatpush1.bf16.msra.mxu0 %v1804_v28 }
 0x546   : > { %2073 = vmatprep.subr.bf16.mxu1 %v1987_v57  ;;  %2114 = vmatprep.subr.bf16.mxu0 %v1897_v30 }
 0x547   : > { %v2037_v52 = vpop.permute.xlu0 %2036 }
 0x549   : > { %2074 = vmatpush1.bf16.msra.mxu1 %v1986_v62  ;;  %2115 = vmatpush1.bf16.msra.mxu0 %v1896_v51 }
 0x54a   : > { %2116 = vmatprep.subr.bf16.mxu0 %v1989_v50 }
 0x54c   : > { %2090 = vmatmul.mubr.bf16.vlgmr.msra.gmra.mrb[8].mxu1 %v2897_v10 }
 0x54d   : > { %2257 = vmatprep.mubr.bf16.mxu1 %v4399_v17  ;;  %2117 = vmatpush1.bf16.msra.mxu0 %v1988_v49 }
 0x550   : > { %2133 = vmatmul.mubr.bf16.vlgmr.msra.gmra.mrb[12].mxu0 %v2897_v10 }
 0x61f   : > { %v2091_v55 = vpop.f32.mrb[8].mxu1 }
 0x620   : > { %v2092_v56 = vadd.f32 %v2091_v55, %v2037_v52  ;;  %v2093_v15 = vpop.f32.mrb[9].mxu1  ;;  %v997_v55 = vpop.permute.xlu0 %996 }
 0x621   : > { %v2094_v43 = vadd.f32 %v2093_v15, %v2037_v52  ;;  %v2095_v23 = vpop.f32.mrb[10].mxu1 }
 0x622   : > { %v2563_v25 = vmul.f32 -1.442695, %v2092_v56  ;;  %v2096_v13 = vadd.f32 %v2095_v23, %v2042_v24  ;;  %v2097_v12 = vpop.f32.mrb[11].mxu1  ;;  %v4402_v23 = vld [vmem:[#allocation15_spill] sm:$0xff] }
 0x623   : > { %v2564_v45 = vmul.f32 -1.442695, %v2094_v43  ;;  %v2098_v42 = vadd.f32 %v2097_v12, %v2042_v24  ;;  %v2134_v58 = vpop.f32.mrb[12].mxu0 }
 0x624   : > { %2981 = vpow2.f32 %v2563_v25  ;;  %v2567_v36 = vmul.f32 -1.442695, %v2096_v13  ;;  %v2135_v21 = vadd.f32 %v2134_v58, %v2037_v52  ;;  %v2136_v53 = vpop.f32.mrb[13].mxu0  ;;  %v4166_v25 = vadd.f32 %v4402_v23, %v997_v55 }
 0x625   : > { %2983 = vpow2.f32 %v2564_v45  ;;  %v2568_v34 = vmul.f32 -1.442695, %v2098_v42  ;;  %v2137_v22 = vadd.f32 %v2136_v53, %v2037_v52  ;;  %v2138_v62 = vpop.f32.mrb[14].mxu0  ;;  %v1002_v52 = vpop.permute.xlu1 %1001  ;;  %v4403_v45 = vld [vmem:[#allocation16_spill] sm:$0xff]  ;;  %v4406_v53 = vld [vmem:[#allocation19_spill] sm:$0xff] }
 0x626   : > { %2985 = vpow2.f32 %v2567_v36  ;;  %v2565_v40 = vmul.f32 -1.442695, %v2135_v21  ;;  %v2139_v61 = vadd.f32 %v2138_v62, %v2042_v24  ;;  %v2140_v32 = vpop.f32.mrb[15].mxu0  ;;  %v4404_v36 = vld [vmem:[#allocation21_spill] sm:$0xff]  ;;  %v4407_v62 = vld [vmem:[#allocation20_spill] sm:$0xff] }
 0x627   : > { %2987 = vpow2.f32 %v2568_v34  ;;  %v2566_v31 = vmul.f32 -1.442695, %v2137_v22  ;;  %v2141_v47 = vadd.f32 %v2140_v32, %v2042_v24  ;;  %v4401_v24 = vld [vmem:[#allocation18_spill] sm:$0xff]  ;;  %v4175_v58 = vadd.f32 %v4404_v36, %v1002_v52 }
 0x628   : > { %2989 = vpow2.f32 %v2565_v40  ;;  %v2569_v38 = vmul.f32 -1.442695, %v2139_v61  ;;  %v4405_v34 = vld [vmem:[#allocation22_spill] sm:$0xff]  ;;  %v4184_v40 = vadd.f32 %v4407_v62, %v997_v55 }
 0x629   : > { %2991 = vpow2.f32 %v2566_v31  ;;  %v2570_v2 = vmul.f32 -1.442695, %v2141_v47  ;;  %v2534_v32 = vmul.f32 -1.442695, %v4175_v58 }
 0x62a   : > { %2993 = vpow2.f32 %v2569_v38  ;;  %v2531_v38 = vmul.f32 -1.442695, %v4184_v40 }
 0x62b   : > { %2995 = vpow2.f32 %v2570_v2  ;;  %v2210_v2 = vpop.permute.xlu0 %2209 }
 0x62e   : > { %v2982_v14 = vpop.eup %2981 }
 0x62f   : > { %v2984_v39 = vpop.eup %2983  ;;  %v2167_v35 = vadd.f32 1.0, %v2982_v14 }
 0x630   : > { %v2986_v54 = vpop.eup %2985  ;;  %v2168_v48 = vadd.f32 1.0, %v2984_v39 }
 0x631   : > { %v2988_v27 = vpop.eup %2987  ;;  %2997 = vrcp.f32 %v2167_v35  ;;  %v2171_v20 = vadd.f32 1.0, %v2986_v54  ;;  %v2215_v54 = vpop.permute.xlu1 %2214 }
 0x632   : > { %2999 = vrcp.f32 %v2168_v48  ;;  %v2172_v11 = vadd.f32 1.0, %v2988_v27  ;;  %v2990_v19 = vpop.eup %2989 }
 0x633   : > { %3001 = vrcp.f32 %v2171_v20  ;;  %v2992_v3 = vpop.eup %2991  ;;  %v2169_v29 = vadd.f32 1.0, %v2990_v19 }
 0x634   : > { %3003 = vrcp.f32 %v2172_v11  ;;  %v2994_v33 = vpop.eup %2993  ;;  %v2170_v44 = vadd.f32 1.0, %v2992_v3 }
 0x635   : > { %v2996_v8 = vpop.eup %2995  ;;  %3005 = vrcp.f32 %v2169_v29  ;;  %v2173_v0 = vadd.f32 1.0, %v2994_v33 }
 0x636   : > { %3007 = vrcp.f32 %v2170_v44  ;;  %v2174_v57 = vadd.f32 1.0, %v2996_v8 }
 0x637   : > { %3009 = vrcp.f32 %v2173_v0 }
 0x638   : > { %3011 = vrcp.f32 %v2174_v57 }
 0x63b   : > { %v2998_v9 = vpop.eup %2997 }
 0x63c   : > { %v3000_v60 = vpop.eup %2999  ;;  %v2191_v18 = vmul.f32 %v2998_v9, %v2092_v56  ;;  %v4400_v56 = vld [vmem:[#allocation17_spill] sm:$0xff] }
 0x63d   : > { %v3002_v1 = vpop.eup %3001  ;;  %v2192_v41 = vmul.f32 %v3000_v60, %v2094_v43  ;;  %v4160_v15 = vadd.f32 %v4400_v56, %v1002_v52  ;;  %v4163_v43 = vadd.f32 %v4401_v24, %v1002_v52 }
 0x63e   : > { %v3004_v46 = vpop.eup %3003  ;;  %v2195_v6 = vmul.f32 %v3002_v1, %v2096_v13 }
 0x63f   : > { %v2196_v26 = vmul.f32 %v3004_v46, %v2098_v42  ;;  %v3006_v59 = vpop.eup %3005  ;;  %v2532_v13 = vmul.f32 -1.442695, %v4160_v15  ;;  %v2533_v12 = vmul.f32 -1.442695, %v4163_v43  ;;  %v4172_v42 = vadd.f32 %v4403_v45, %v997_v55 }
 0x640   : > { %v2201_v28 = vpack.c.bf16 %v2195_v6, %v2191_v18  ;;  %v3008_v16 = vpop.eup %3007  ;;  %v2193_v37 = vmul.f32 %v3006_v59, %v2135_v21  ;;  %v4178_v21 = vadd.f32 %v4405_v34, %v1002_v52 }
 0x641   : > { %v2202_v7 = vpack.c.bf16 %v2196_v26, %v2192_v41  ;;  %v3010_v63 = vpop.eup %3009  ;;  %v2194_v30 = vmul.f32 %v3008_v16, %v2137_v22  ;;  %3013 = vpow2.f32 %v2532_v13  ;;  %v4181_v22 = vadd.f32 %v4406_v53, %v997_v55 }
 0x642   : > { %v3012_v49 = vpop.eup %3011  ;;  %v2197_v51 = vmul.f32 %v3010_v63, %v2139_v61  ;;  %3015 = vpow2.f32 %v2533_v12  ;;  %v2529_v61 = vmul.f32 -1.442695, %v4172_v42  ;;  %v2535_v31 = vmul.f32 -1.442695, %v4178_v21 }
 0x643   : > { %2225 = vmatprep.subr.bf16.mxu1 %v2202_v7  ;;  %v2198_v4 = vmul.f32 %v3012_v49, %v2141_v47  ;;  %v2530_v47 = vmul.f32 -1.442695, %v4181_v22 }
 0x644   : > { %2226 = vmatpush1.bf16.msra.mxu1 %v2201_v28  ;;  %v2203_v50 = vpack.c.bf16 %v2197_v51, %v2193_v37 }
 0x645   : > { %v2204_v10 = vpack.c.bf16 %v2198_v4, %v2194_v30 }
 0x647   : > { %2572 = vmatmul.mubr.msk.bf16.vlgmr.msra.gmra.mrb[12].mxu1 %vm2053_vm3, %v2900_v5  ;;  %2268 = vmatprep.subr.bf16.mxu1 %v2204_v10 }
 0x648   : > { %2300 = vmatprep.mubr.bf16.mxu1 %v4399_v17  ;;  %2269 = vmatpush1.bf16.msra.mxu1 %v2203_v50  ;;  %v2528_v17 = vmul.f32 -1.442695, %v4166_v25 }
 0x64a   : > { %3017 = vpow2.f32 %v2528_v17 }
 0x64b   : > { %3019 = vpow2.f32 %v2529_v61  ;;  %v3014_v20 = vpop.eup %3013 }
 0x64c   : > { %3021 = vpow2.f32 %v2534_v32  ;;  %v3016_v29 = vpop.eup %3015  ;;  %v1165_v57 = vadd.f32 1.0, %v3014_v20 }
 0x64d   : > { %3023 = vpow2.f32 %v2535_v31  ;;  %v1166_v60 = vadd.f32 1.0, %v3016_v29 }
 0x64e   : > { %3025 = vpow2.f32 %v2530_v47 }
 0x64f   : > { %2573 = vmatmul.mubr.msk.bf16.vlgmr.msra.gmra.mrb[16].mxu1 %vm2053_vm3, %v2900_v5  ;;  %3027 = vpow2.f32 %v2531_v38 }
 0x654   : > { %v3018_v8 = vpop.eup %3017 }
 0x655   : > { %v1161_v1 = vadd.f32 1.0, %v3018_v8  ;;  %v3020_v41 = vpop.eup %3019 }
 0x656   : > { %v3022_v28 = vpop.eup %3021  ;;  %v1162_v30 = vadd.f32 1.0, %v3020_v41 }
 0x657   : > { %v3024_v49 = vpop.eup %3023  ;;  %v1167_v12 = vadd.f32 1.0, %v3022_v28 }
 0x658   : > { %v3026_v5 = vpop.eup %3025  ;;  %v1168_v45 = vadd.f32 1.0, %v3024_v49 }
 0x659   : > { %v3028_v50 = vpop.eup %3027  ;;  %v1163_v53 = vadd.f32 1.0, %v3026_v5 }
 0x65a   : > { %v1164_v61 = vadd.f32 1.0, %v3028_v50 }
 0x71a   : > { %v2259_v14 = vpop.f32.mrb[12].mxu1 }
 0x71b   : > { %v4191_v39 = vadd.f32 %v2259_v14, %v2210_v2  ;;  %v2261_v35 = vpop.f32.mrb[13].mxu1 }
 0x71c   : > { %v4193_v48 = vadd.f32 %v2261_v35, %v2210_v2  ;;  %v2263_v27 = vpop.f32.mrb[14].mxu1 }
 0x71d   : > { %v2574_v11 = vmul.f32 -1.442695, %v4191_v39  ;;  %v4196_v19 = vadd.f32 %v2263_v27, %v2215_v54  ;;  %v2265_v3 = vpop.f32.mrb[15].mxu1 }
 0x71e   : > { %v2575_v33 = vmul.f32 -1.442695, %v4193_v48  ;;  %v4199_v44 = vadd.f32 %v2265_v3, %v2215_v54 }
 0x71f   : > { %3029 = vpow2.f32 %v2574_v11  ;;  %v2578_v0 = vmul.f32 -1.442695, %v4196_v19 }
 0x720   : > { %3031 = vpow2.f32 %v2575_v33  ;;  %v2579_v9 = vmul.f32 -1.442695, %v4199_v44 }
 0x721   : > { %3033 = vpow2.f32 %v2578_v0 }
 0x722   : > { %3035 = vpow2.f32 %v2579_v9  ;;  %v2302_v46 = vpop.f32.mrb[16].mxu1 }
 0x723   : > { %v4203_v18 = vadd.f32 %v2302_v46, %v2210_v2  ;;  %v2304_v6 = vpop.f32.mrb[17].mxu1  ;;  %3037 = vrcp.f32 %v1165_v57 }
 0x724   : > { %v4205_v26 = vadd.f32 %v2304_v6, %v2210_v2  ;;  %v2306_v59 = vpop.f32.mrb[18].mxu1  ;;  %3039 = vrcp.f32 %v1166_v60 }
 0x725   : > { %v2576_v16 = vmul.f32 -1.442695, %v4203_v18  ;;  %v4208_v7 = vadd.f32 %v2306_v59, %v2215_v54  ;;  %v2308_v63 = vpop.f32.mrb[19].mxu1  ;;  %3041 = vrcp.f32 %v1161_v1 }
 0x726   : > { %v2577_v37 = vmul.f32 -1.442695, %v4205_v26  ;;  %v4211_v51 = vadd.f32 %v2308_v63, %v2215_v54 }
 0x727   : > { %3043 = vpow2.f32 %v2576_v16  ;;  %v2580_v4 = vmul.f32 -1.442695, %v4208_v7 }
 0x728   : > { %3045 = vpow2.f32 %v2577_v37  ;;  %v2581_v10 = vmul.f32 -1.442695, %v4211_v51 }
 0x729   : > { %v3030_v52 = vpop.eup %3029  ;;  %3047 = vpow2.f32 %v2580_v4 }
 0x72a   : > { %v3032_v55 = vpop.eup %3031  ;;  %v2335_v56 = vadd.f32 1.0, %v3030_v52  ;;  %3049 = vpow2.f32 %v2581_v10 }
 0x72b   : > { %v3034_v24 = vpop.eup %3033  ;;  %3051 = vrcp.f32 %v1162_v30  ;;  %v2336_v23 = vadd.f32 1.0, %v3032_v55 }
 0x72c   : > { %v3036_v13 = vpop.eup %3035  ;;  %3053 = vrcp.f32 %v2335_v56  ;;  %v2339_v17 = vadd.f32 1.0, %v3034_v24 }
 0x72d   : > { %3055 = vrcp.f32 %v2336_v23  ;;  %v2340_v36 = vadd.f32 1.0, %v3036_v13  ;;  %v3038_v34 = vpop.eup %3037 }
 0x72e   : > { %3057 = vrcp.f32 %v2339_v17  ;;  %v3040_v62 = vpop.eup %3039  ;;  %v1189_v1 = vmul.f32 %v3038_v34, %v4160_v15 }
 0x72f   : > { %3059 = vrcp.f32 %v2340_v36  ;;  %v3042_v32 = vpop.eup %3041  ;;  %v1190_v59 = vmul.f32 %v3040_v62, %v4163_v43 }
 0x730   : > { %3061 = vrcp.f32 %v1167_v12  ;;  %v1185_v29 = vmul.f32 %v3042_v32, %v4166_v25 }
 0x731   : > { %v3044_v31 = vpop.eup %3043  ;;  %3063 = vrcp.f32 %v1168_v45 }
 0x732   : > { %v3046_v47 = vpop.eup %3045  ;;  %3065 = vrcp.f32 %v1163_v53  ;;  %v2337_v38 = vadd.f32 1.0, %v3044_v31 }
 0x733   : > { %v3048_v2 = vpop.eup %3047  ;;  %3067 = vrcp.f32 %v1164_v61  ;;  %v2338_v14 = vadd.f32 1.0, %v3046_v47 }
 0x734   : > { %v3050_v35 = vpop.eup %3049  ;;  %3069 = vrcp.f32 %v2337_v38  ;;  %v2341_v54 = vadd.f32 1.0, %v3048_v2 }
 0x735   : > { %v3052_v27 = vpop.eup %3051  ;;  %3071 = vrcp.f32 %v2338_v14  ;;  %v2342_v20 = vadd.f32 1.0, %v3050_v35 }
 0x736   : > { %v3054_v11 = vpop.eup %3053  ;;  %3073 = vrcp.f32 %v2341_v54  ;;  %v1186_v0 = vmul.f32 %v3052_v27, %v4172_v42 }
 0x737   : > { %v3056_v3 = vpop.eup %3055  ;;  %v2359_v33 = vmul.f32 %v3054_v11, %v4191_v39  ;;  %3075 = vrcp.f32 %v2342_v20 }
 0x738   : > { %v3058_v8 = vpop.eup %3057  ;;  %v2360_v57 = vmul.f32 %v3056_v3, %v4193_v48 }
 0x739   : > { %v3060_v9 = vpop.eup %3059  ;;  %v2367_v60 = vadd.f32 %v2359_v33, %v1185_v29  ;;  %v2363_v46 = vmul.f32 %v3058_v8, %v4196_v19 }
 0x73a   : > { %v3062_v6 = vpop.eup %3061  ;;  %v2368_v41 = vadd.f32 %v2360_v57, %v1186_v0  ;;  %v2364_v25 = vmul.f32 %v3060_v9, %v4199_v44 }
 0x73b   : > { %v3064_v28 = vpop.eup %3063  ;;  %2375 = vst [vmem:[%s4224_s14] sm:$0xff] %v2367_v60  ;;  %v2371_v42 = vadd.f32 %v2363_v46, %v1189_v1  ;;  %v1191_v4 = vmul.f32 %v3062_v6, %v4175_v58 }
 0x73c   : > { %v3066_v39 = vpop.eup %3065  ;;  %2376 = vst [vmem:[%s4224_s14 + $0x8] sm:$0xff] %v2368_v41  ;;  %v2372_v15 = vadd.f32 %v2364_v25, %v1190_v59 }
 0x73d   : > { %v3068_v48 = vpop.eup %3067  ;;  %2377 = vst [vmem:[%s4224_s14 + $0x10] sm:$0xff] %v2371_v42  ;;  %v1187_v44 = vmul.f32 %v3066_v39, %v4181_v22 }
 0x73e   : > { %v3070_v19 = vpop.eup %3069  ;;  %2378 = vst [vmem:[%s4224_s14 + $0x18] sm:$0xff] %v2372_v15  ;;  %v1188_v49 = vmul.f32 %v3068_v48, %v4184_v40 }
 0x73f   : > { %v3072_v43 = vpop.eup %3071  ;;  %v2361_v16 = vmul.f32 %v3070_v19, %v4203_v18  ;;  %v1192_v18 = vmul.f32 %v3064_v28, %v4178_v21 }
 0x740   : > { %v3074_v63 = vpop.eup %3073  ;;  %v2362_v37 = vmul.f32 %v3072_v43, %v4205_v26 }
 0x741   : > { %v3076_v5 = vpop.eup %3075  ;;  %v2369_v30 = vadd.f32 %v2361_v16, %v1187_v44  ;;  %v2365_v50 = vmul.f32 %v3074_v63, %v4208_v7 }
 0x742   : > { %v2370_v22 = vadd.f32 %v2362_v37, %v1188_v49  ;;  %v2366_v10 = vmul.f32 %v3076_v5, %v4211_v51 }
 0x743   : > { %2582 = vst [vmem:[%s4224_s14 + $0x20] sm:$0xff] %v2369_v30  ;;  %v2373_v40 = vadd.f32 %v2365_v50, %v1191_v4 }
 0x744   : > { %2583 = vst [vmem:[%s4224_s14 + $0x28] sm:$0xff] %v2370_v22  ;;  %v2374_v26 = vadd.f32 %v2366_v10, %v1192_v18 }
 0x745   : > { %2584 = vst [vmem:[%s4224_s14 + $0x30] sm:$0xff] %v2373_v40 }
 0x746   : > { %2585 = vst [vmem:[%s4224_s14 + $0x38] sm:$0xff] %v2374_v26 }
 0x747   : > { %3120 = shalt.err (!%p3117_p4)
}
 0x748   : > { %s3121_s27 = scalar_lea.hbm %s4244_s29, 1024  ;;  %s3125_s19 = scalar_lea.hbm %s4307_s13, 2048 }
 0x749   : > { %p3122_p5 = scmp.ne.s32.totalorder %s4244_s29, %s3121_s27  ;;  %p3126_p1 = scmp.lt.u32.totalorder %s4244_s29, %s4307_s13 }
 0x74a   : > { %p3127_p3 = scmp.lt.u32.totalorder %s3125_s19, %s3121_s27  ;;  %p3129_p11 = scmp.lt.u32.totalorder %s3121_s27, %s4244_s29 }
 0x74b   : > { %p3123_p7 = pnand %p3122_p5, %p4408_p12 }
 0x74c   : > { %p3128_p6 = por %p3127_p3, %p3126_p1 }
 0x74d   : > { %p3124_p9 = pneg %p3123_p7 }
 0x74e   : > { %p3130_p13 = por %p3129_p11, %p3128_p6 }
 0x750   : > { %p3131_p8 = pnand %p3130_p13, %p3124_p9 }
 0x752   : > { %3134 = shalt.err (!%p3131_p8)
}
 0x753   : > { %s3190_s22 = smov 256   ;;  %s4409_s18 = smov 16  }
 0x754   : > { %2649 = dma.vmem_to_hbm [thread:$0]  (%p4408_p12), %s4247_s16, 1024, %s4244_s29, %s2385_s15, %s3190_s22, %s3190_s22, %s4409_s18  }
 0x755 PF: > { %s4410_s23 = sld [smem:[#allocation11_spill]]  ;;  %p4411_p10 = scmp.ne.s32.totalorder %s4326_s21, 0 }
 0x756   : > { %p4412_p0 = scmp.ge.s32.totalorder %s3173_s28, 2 }
 0x758   : > { %p2656_p2 = pnand %p4412_p0, %p4411_p10 }
 0x75b   : > { %s2414_s25 = sand.u32 1, %s4410_s23  }
 0x75c   : > { %s2415_s27 = scalar_lea.sflag [#allocation7], %s2414_s25 }
 0x75d   : > { %3156 = dma.done.wait (!%p2656_p2), %s2415_s27, 1024  }
 0x75e   : > { %3158 = vsyncadd (!%p2656_p2), %s2415_s27, 4294966272  ;;  %s4413_s28 = sld [smem:[#allocation13_spill]]  ;;  %s4414_s20 = sld [smem:[#allocation12_spill]] }
 0x75f   : > { %s4415_s27 = sld [smem:[#allocation14_spill]]  ;;  %s4416_s25 = smov %s3165_s26 }
 0x764   : > { %p26_p4 = scmp.ge.s32.totalorder %s4413_s28, 4   ;;  %s4417_s26 = smov %s4414_s20 }
 0x766   :  { %28 = sbr.rel (!%p26_p4) target bundleno = 7 (0x7), region = 130 }
 0x76d   :  { %2420 = vsyncpa [#allocation6], 1 }
 0x76e   :  { %2422 = vsyncpa [#allocation6 + $0x1], 1 }
 0x76f   :  { %2423 = vsyncpa [#allocation7], 1 }
 0x770   :  { %2425 = vsyncpa [#allocation7 + $0x1], 1 }

</bundles_post_ra>
